<compile_context>
chip_gen: v7x
topology: tpu7x:2x2x1
jax: 0.10.0
libtpu: 0.0.40
codegen_flags: <defaults>
</compile_context>

<pallas_src>
import functools

import jax
import jax.numpy as jnp
from jax.experimental import pallas as pl
from jax.experimental.pallas import tpu as pltpu


def _round_up(x, m):
    return ((x + m - 1) // m) * m


def conv2d_relu_kernel(x_ref, w_ref, b_ref, o_ref, xpad_ref, lhs_ref, *,
                       KH, KW, pad, tile_ho, tile_co):
    # x_ref   : (1, H, W, Cin)                whole (unpadded) image, VMEM
    # w_ref   : (K_pad, co_pad)               folded-tap weights (zero padded)
    # b_ref   : (tile_co, 1)                  f32 bias column
    # o_ref   : (1, tile_co, tile_m)          NCHW-flat output strip (lane dense)
    # xpad_ref: (tile_ho+KH-1, Wo+KW-1, Cin)  padded input strip scratch
    # lhs_ref : (tile_m, K_pad)               im2col LHS scratch
    H, W, Cin = x_ref.shape[1], x_ref.shape[2], x_ref.shape[3]
    Hs, Ws, _ = xpad_ref.shape
    Wo = Ws - (KW - 1)
    tile_m = tile_ho * Wo

    t = pl.program_id(2)                 # output-row strip index
    in_row0 = t * tile_ho - pad          # input row behind xpad row 0 (may be < 0)

    # ---- in-kernel zero padding: build the padded input strip in VMEM ------
    xpad_ref[...] = jnp.zeros_like(xpad_ref)
    for j in range(Hs):                  # static, small (tile_ho + KH - 1 rows)
        src = in_row0 + j

        @pl.when(jnp.logical_and(src >= 0, src < H))
        def _copy_row(j=j, src=src):
            xpad_ref[j, pad:pad + W, :] = x_ref[0, src, :, :]

    # ---- im2col: taps folded into one contraction axis ---------------------
    # Zero once so the K tail (K..K_pad) is well defined; the 9 tap slabs then
    # overwrite the live columns.  Total VMEM traffic is one LHS tile per step
    # (no accumulator loads/stores).
    lhs_ref[...] = jnp.zeros_like(lhs_ref)
    for kh in range(KH):
        for kw in range(KW):
            c0 = (kh * KW + kw) * Cin
            patch = xpad_ref[kh:kh + tile_ho, kw:kw + Wo, :]      # (tile_ho, Wo, Cin)
            lhs_ref[:, c0:c0 + Cin] = patch.reshape(tile_m, Cin)

    # ---- single MXU matmul over folded K = KH*KW*Cin (lane aligned) --------
    acc = jnp.dot(lhs_ref[...], w_ref[...],
                  preferred_element_type=jnp.float32)             # (tile_m, co_pad) f32

    # ---- lane-dense epilogue: transpose, bias, ReLU, one unmasked store ----
    acc_t = jnp.transpose(acc)[:tile_co, :]                       # (tile_co, tile_m)
    y = jnp.maximum(acc_t + b_ref[...], 0.0)
    o_ref[0] = y.astype(o_ref.dtype)


def conv2d_relu(x_nchw, weight_oihw, bias, padding=1):
    """Forward of Conv2dReLU (bn=False): Conv2d(kernel, stride=1, padding) + ReLU."""
    N, Cin, H, W = x_nchw.shape
    Cout, Cin_w, KH, KW = weight_oihw.shape
    assert Cin == Cin_w, "input/weight channel mismatch"
    P = int(padding)
    Ho = H + 2 * P - KH + 1
    Wo = W + 2 * P - KW + 1
    assert Ho > 0 and Wo > 0, "kernel larger than padded input"

    # NCHW -> NHWC so Cin sits on lanes for the im2col build (glue only; the
    # activations are NOT padded in HBM).
    x = jnp.transpose(x_nchw, (0, 2, 3, 1))

    # Output-row strip: smallest divisor of Ho whose flat strip (tile_ho*Wo) is
    # a multiple of 128 lanes -> unmasked output stores + several grid steps for
    # pipelining / megacore.  Fallback: whole image (single strip).
    tile_ho = Ho
    for d in range(1, Ho + 1):
        if Ho % d == 0 and (d * Wo) % 128 == 0:
            tile_ho = d
            break
    n_strips = Ho // tile_ho
    tile_m = tile_ho * Wo

    # Cout tiling (matmul N / output sublane dim); 256-wide when possible.
    if Cout % 256 == 0:
        tile_co = 256
    elif Cout % 128 == 0:
        tile_co = 128
    else:
        tile_co = Cout
    n_co = Cout // tile_co
    co_pad = _round_up(tile_co, 128)          # pad matmul N up to full lanes

    # Weights [Cout, Cin, KH, KW] -> folded-tap matrix [(kh,kw,cin), Cout],
    # zero-padded so both the contraction K and the matmul N are lane aligned
    # (zero padding in the weights keeps the single matmul exact).
    K = KH * KW * Cin
    K_pad = _round_up(K, 128)
    w2 = jnp.transpose(weight_oihw, (2, 3, 1, 0)).reshape(K, Cout)
    w2 = jnp.pad(w2, ((0, K_pad - K), (0, n_co * co_pad - Cout)))
    b2 = bias.reshape(Cout, 1).astype(jnp.float32)

    Hs = tile_ho + KH - 1                     # padded strip height (with halo)
    Ws = Wo + KW - 1                          # padded strip width

    kernel = functools.partial(
        conv2d_relu_kernel, KH=KH, KW=KW, pad=P, tile_ho=tile_ho, tile_co=tile_co)

    out_flat = pl.pallas_call(
        kernel,
        out_shape=jax.ShapeDtypeStruct((N, Cout, Ho * Wo), x.dtype),
        grid_spec=pltpu.PrefetchScalarGridSpec(
            num_scalar_prefetch=0,
            grid=(N, n_co, n_strips),
            in_specs=[
                # Whole (unpadded) image; block index constant across (co, t) so
                # it is DMA'd once per image and stays resident in VMEM.
                pl.BlockSpec((1, H, W, Cin), lambda n, co, t: (n, 0, 0, 0)),
                pl.BlockSpec((K_pad, co_pad), lambda n, co, t: (0, co)),
                pl.BlockSpec((tile_co, 1), lambda n, co, t: (co, 0)),
            ],
            out_specs=pl.BlockSpec((1, tile_co, tile_m),
                                   lambda n, co, t: (n, co, t)),
            scratch_shapes=[
                pltpu.VMEM((Hs, Ws, Cin), x.dtype),       # padded input strip
                pltpu.VMEM((tile_m, K_pad), x.dtype),     # im2col LHS tile
            ],
        ),
        compiler_params=pltpu.CompilerParams(
            dimension_semantics=("parallel", "parallel", "parallel"),
            vmem_limit_bytes=32 * 1024 * 1024,
        ),
    )(x, w2, b2)

    # (N, Cout, Ho*Wo) -> (N, Cout, Ho, Wo): free reshape, already NCHW.
    return out_flat.reshape(N, Cout, Ho, Wo)


if __name__ == "__main__":
    # Small shapes consistent with the module: N=2, Cin=4, Cout=8, H=W=16,
    # kernel=3, padding=1.
    N, Cin, Cout, H, W, K, P = 2, 4, 8, 16, 16, 3, 1

    key = jax.random.PRNGKey(0)
    kx, kw_, kb = jax.random.split(key, 3)

    x = jax.random.normal(kx, (N, Cin, H, W), dtype=jnp.float32)

    # Deterministic init mimicking PyTorch Conv2d defaults: U(-1/sqrt(fan_in), +).
    fan_in = Cin * K * K
    bound = 1.0 / (fan_in ** 0.5)
    weight = jax.random.uniform(kw_, (Cout, Cin, K, K), jnp.float32, -bound, bound)
    bias = jax.random.uniform(kb, (Cout,), jnp.float32, -bound, bound)

    out = conv2d_relu(x, weight, bias, padding=P)
    out = jax.block_until_ready(out)

    # Reference check against XLA conv (same semantics as torch Conv2d + ReLU).
    ref = jax.lax.conv_general_dilated(
        x, weight, window_strides=(1, 1), padding=((P, P), (P, P)),
        dimension_numbers=("NCHW", "OIHW", "NCHW"))
    ref = jnp.maximum(ref + bias[None, :, None, None], 0.0)
    assert out.shape == (N, Cout, H, W)
    assert jnp.allclose(out, ref, atol=1e-4, rtol=1e-4)

    print("KERNEL_OK")
</pallas_src>

<mosaic_0001>
module attributes {stable_mosaic.version = 11 : i64} {
  func.func @conv2d_relu_kernel(%arg0: i32, %arg1: i32, %arg2: i32, %arg3: memref<1x16x16x4xf32, #tpu.memory_space<vmem>>, %arg4: memref<128x128xf32, #tpu.memory_space<vmem>>, %arg5: memref<8x1xf32, #tpu.memory_space<vmem>>, %arg6: memref<1x8x128xf32, #tpu.memory_space<vmem>>, %arg7: memref<10x18x4xf32, #tpu.memory_space<vmem>>, %arg8: memref<128x128xf32, #tpu.memory_space<vmem>>) attributes {dimension_semantics = [#tpu.dimension_semantics<parallel>, #tpu.dimension_semantics<parallel>, #tpu.dimension_semantics<parallel>], iteration_bounds = array<i64: 2, 1, 2>, scalar_prefetch = 0 : i64, scratch_operands = 2 : i64, tpu.core_type = #tpu.core_type<tc>, window_params = [{transform_indices = @transform_0, window_bounds = array<i64: 1, 16, 16, 4>}, {transform_indices = @transform_1, window_bounds = array<i64: 128, 128>}, {transform_indices = @transform_2, window_bounds = array<i64: 8, 1>}, {transform_indices = @transform_3, window_bounds = array<i64: 1, 8, 128>}]} {
    %c8_i32 = arith.constant 8 : i32
    %0 = arith.muli %arg2, %c8_i32 : i32
    %c1_i32 = arith.constant 1 : i32
    %1 = arith.subi %0, %c1_i32 : i32
    %cst = arith.constant 0.000000e+00 : f32
    %2 = vector.broadcast %cst : f32 to vector<10x18x4xf32>
    %c0 = arith.constant 0 : index
    %c0_0 = arith.constant 0 : index
    %c0_1 = arith.constant 0 : index
    %3 = vector.load %arg7[%c0, %c0_0, %c0_1] : memref<10x18x4xf32, #tpu.memory_space<vmem>>, vector<10x18x4xf32>
    tpu.vector_store %arg7[%c0, %c0_0, %c0_1], %2 {strides = array<i32>} : memref<10x18x4xf32, #tpu.memory_space<vmem>>, vector<10x18x4xf32>,
    %c0_i32 = arith.constant 0 : i32
    %4 = arith.addi %1, %c0_i32 : i32
    %c0_i32_2 = arith.constant 0 : i32
    %5 = arith.cmpi sge, %4, %c0_i32_2 : i32
    %c16_i32 = arith.constant 16 : i32
    %6 = arith.cmpi slt, %4, %c16_i32 : i32
    %7 = arith.andi %5, %6 : i1
    %8 = arith.extui %7 : i1 to i32
    %c0_i32_3 = arith.constant 0 : i32
    %9 = arith.cmpi ne, %8, %c0_i32_3 : i32
    scf.if %9 {
      %c0_82 = arith.constant 0 : index
      %106 = arith.index_cast %4 : i32 to index
      %c0_83 = arith.constant 0 : index
      %c0_84 = arith.constant 0 : index
      %107 = vector.load %arg3[%c0_82, %106, %c0_83, %c0_84] : memref<1x16x16x4xf32, #tpu.memory_space<vmem>>, vector<1x1x16x4xf32>
      %108 = vector.shape_cast %107 : vector<1x1x16x4xf32> to vector<16x4xf32>
      %c0_85 = arith.constant 0 : index
      %c1_86 = arith.constant 1 : index
      %c0_87 = arith.constant 0 : index
      %109 = vector.load %arg7[%c0_85, %c1_86, %c0_87] : memref<10x18x4xf32, #tpu.memory_space<vmem>>, vector<1x16x4xf32>
      %110 = vector.shape_cast %109 : vector<1x16x4xf32> to vector<16x4xf32>
      %111 = vector.shape_cast %108 : vector<16x4xf32> to vector<1x16x4xf32>
      tpu.vector_store %arg7[%c0_85, %c1_86, %c0_87], %111 {strides = array<i32>} : memref<10x18x4xf32, #tpu.memory_space<vmem>>, vector<1x16x4xf32>,
    } else {
    }
    %c1_i32_4 = arith.constant 1 : i32
    %10 = arith.addi %1, %c1_i32_4 : i32
    %c0_i32_5 = arith.constant 0 : i32
    %11 = arith.cmpi sge, %10, %c0_i32_5 : i32
    %c16_i32_6 = arith.constant 16 : i32
    %12 = arith.cmpi slt, %10, %c16_i32_6 : i32
    %13 = arith.andi %11, %12 : i1
    %14 = arith.extui %13 : i1 to i32
    %c0_i32_7 = arith.constant 0 : i32
    %15 = arith.cmpi ne, %14, %c0_i32_7 : i32
    scf.if %15 {
      %c0_82 = arith.constant 0 : index
      %106 = arith.index_cast %10 : i32 to index
      %c0_83 = arith.constant 0 : index
      %c0_84 = arith.constant 0 : index
      %107 = vector.load %arg3[%c0_82, %106, %c0_83, %c0_84] : memref<1x16x16x4xf32, #tpu.memory_space<vmem>>, vector<1x1x16x4xf32>
      %108 = vector.shape_cast %107 : vector<1x1x16x4xf32> to vector<16x4xf32>
      %c1_85 = arith.constant 1 : index
      %c1_86 = arith.constant 1 : index
      %c0_87 = arith.constant 0 : index
      %109 = vector.load %arg7[%c1_85, %c1_86, %c0_87] : memref<10x18x4xf32, #tpu.memory_space<vmem>>, vector<1x16x4xf32>
      %110 = vector.shape_cast %109 : vector<1x16x4xf32> to vector<16x4xf32>
      %111 = vector.shape_cast %108 : vector<16x4xf32> to vector<1x16x4xf32>
      tpu.vector_store %arg7[%c1_85, %c1_86, %c0_87], %111 {strides = array<i32>} : memref<10x18x4xf32, #tpu.memory_space<vmem>>, vector<1x16x4xf32>,
    } else {
    }
    %c2_i32 = arith.constant 2 : i32
    %16 = arith.addi %1, %c2_i32 : i32
    %c0_i32_8 = arith.constant 0 : i32
    %17 = arith.cmpi sge, %16, %c0_i32_8 : i32
    %c16_i32_9 = arith.constant 16 : i32
    %18 = arith.cmpi slt, %16, %c16_i32_9 : i32
    %19 = arith.andi %17, %18 : i1
    %20 = arith.extui %19 : i1 to i32
    %c0_i32_10 = arith.constant 0 : i32
    %21 = arith.cmpi ne, %20, %c0_i32_10 : i32
    scf.if %21 {
      %c0_82 = arith.constant 0 : index
      %106 = arith.index_cast %16 : i32 to index
      %c0_83 = arith.constant 0 : index
      %c0_84 = arith.constant 0 : index
      %107 = vector.load %arg3[%c0_82, %106, %c0_83, %c0_84] : memref<1x16x16x4xf32, #tpu.memory_space<vmem>>, vector<1x1x16x4xf32>
      %108 = vector.shape_cast %107 : vector<1x1x16x4xf32> to vector<16x4xf32>
      %c2_85 = arith.constant 2 : index
      %c1_86 = arith.constant 1 : index
      %c0_87 = arith.constant 0 : index
      %109 = vector.load %arg7[%c2_85, %c1_86, %c0_87] : memref<10x18x4xf32, #tpu.memory_space<vmem>>, vector<1x16x4xf32>
      %110 = vector.shape_cast %109 : vector<1x16x4xf32> to vector<16x4xf32>
      %111 = vector.shape_cast %108 : vector<16x4xf32> to vector<1x16x4xf32>
      tpu.vector_store %arg7[%c2_85, %c1_86, %c0_87], %111 {strides = array<i32>} : memref<10x18x4xf32, #tpu.memory_space<vmem>>, vector<1x16x4xf32>,
    } else {
    }
    %c3_i32 = arith.constant 3 : i32
    %22 = arith.addi %1, %c3_i32 : i32
    %c0_i32_11 = arith.constant 0 : i32
    %23 = arith.cmpi sge, %22, %c0_i32_11 : i32
    %c16_i32_12 = arith.constant 16 : i32
    %24 = arith.cmpi slt, %22, %c16_i32_12 : i32
    %25 = arith.andi %23, %24 : i1
    %26 = arith.extui %25 : i1 to i32
    %c0_i32_13 = arith.constant 0 : i32
    %27 = arith.cmpi ne, %26, %c0_i32_13 : i32
    scf.if %27 {
      %c0_82 = arith.constant 0 : index
      %106 = arith.index_cast %22 : i32 to index
      %c0_83 = arith.constant 0 : index
      %c0_84 = arith.constant 0 : index
      %107 = vector.load %arg3[%c0_82, %106, %c0_83, %c0_84] : memref<1x16x16x4xf32, #tpu.memory_space<vmem>>, vector<1x1x16x4xf32>
      %108 = vector.shape_cast %107 : vector<1x1x16x4xf32> to vector<16x4xf32>
      %c3 = arith.constant 3 : index
      %c1_85 = arith.constant 1 : index
      %c0_86 = arith.constant 0 : index
      %109 = vector.load %arg7[%c3, %c1_85, %c0_86] : memref<10x18x4xf32, #tpu.memory_space<vmem>>, vector<1x16x4xf32>
      %110 = vector.shape_cast %109 : vector<1x16x4xf32> to vector<16x4xf32>
      %111 = vector.shape_cast %108 : vector<16x4xf32> to vector<1x16x4xf32>
      tpu.vector_store %arg7[%c3, %c1_85, %c0_86], %111 {strides = array<i32>} : memref<10x18x4xf32, #tpu.memory_space<vmem>>, vector<1x16x4xf32>,
    } else {
    }
    %c4_i32 = arith.constant 4 : i32
    %28 = arith.addi %1, %c4_i32 : i32
    %c0_i32_14 = arith.constant 0 : i32
    %29 = arith.cmpi sge, %28, %c0_i32_14 : i32
    %c16_i32_15 = arith.constant 16 : i32
    %30 = arith.cmpi slt, %28, %c16_i32_15 : i32
    %31 = arith.andi %29, %30 : i1
    %32 = arith.extui %31 : i1 to i32
    %c0_i32_16 = arith.constant 0 : i32
    %33 = arith.cmpi ne, %32, %c0_i32_16 : i32
    scf.if %33 {
      %c0_82 = arith.constant 0 : index
      %106 = arith.index_cast %28 : i32 to index
      %c0_83 = arith.constant 0 : index
      %c0_84 = arith.constant 0 : index
      %107 = vector.load %arg3[%c0_82, %106, %c0_83, %c0_84] : memref<1x16x16x4xf32, #tpu.memory_space<vmem>>, vector<1x1x16x4xf32>
      %108 = vector.shape_cast %107 : vector<1x1x16x4xf32> to vector<16x4xf32>
      %c4_85 = arith.constant 4 : index
      %c1_86 = arith.constant 1 : index
      %c0_87 = arith.constant 0 : index
      %109 = vector.load %arg7[%c4_85, %c1_86, %c0_87] : memref<10x18x4xf32, #tpu.memory_space<vmem>>, vector<1x16x4xf32>
      %110 = vector.shape_cast %109 : vector<1x16x4xf32> to vector<16x4xf32>
      %111 = vector.shape_cast %108 : vector<16x4xf32> to vector<1x16x4xf32>
      tpu.vector_store %arg7[%c4_85, %c1_86, %c0_87], %111 {strides = array<i32>} : memref<10x18x4xf32, #tpu.memory_space<vmem>>, vector<1x16x4xf32>,
    } else {
    }
    %c5_i32 = arith.constant 5 : i32
    %34 = arith.addi %1, %c5_i32 : i32
    %c0_i32_17 = arith.constant 0 : i32
    %35 = arith.cmpi sge, %34, %c0_i32_17 : i32
    %c16_i32_18 = arith.constant 16 : i32
    %36 = arith.cmpi slt, %34, %c16_i32_18 : i32
    %37 = arith.andi %35, %36 : i1
    %38 = arith.extui %37 : i1 to i32
    %c0_i32_19 = arith.constant 0 : i32
    %39 = arith.cmpi ne, %38, %c0_i32_19 : i32
    scf.if %39 {
      %c0_82 = arith.constant 0 : index
      %106 = arith.index_cast %34 : i32 to index
      %c0_83 = arith.constant 0 : index
      %c0_84 = arith.constant 0 : index
      %107 = vector.load %arg3[%c0_82, %106, %c0_83, %c0_84] : memref<1x16x16x4xf32, #tpu.memory_space<vmem>>, vector<1x1x16x4xf32>
      %108 = vector.shape_cast %107 : vector<1x1x16x4xf32> to vector<16x4xf32>
      %c5 = arith.constant 5 : index
      %c1_85 = arith.constant 1 : index
      %c0_86 = arith.constant 0 : index
      %109 = vector.load %arg7[%c5, %c1_85, %c0_86] : memref<10x18x4xf32, #tpu.memory_space<vmem>>, vector<1x16x4xf32>
      %110 = vector.shape_cast %109 : vector<1x16x4xf32> to vector<16x4xf32>
      %111 = vector.shape_cast %108 : vector<16x4xf32> to vector<1x16x4xf32>
      tpu.vector_store %arg7[%c5, %c1_85, %c0_86], %111 {strides = array<i32>} : memref<10x18x4xf32, #tpu.memory_space<vmem>>, vector<1x16x4xf32>,
    } else {
    }
    %c6_i32 = arith.constant 6 : i32
    %40 = arith.addi %1, %c6_i32 : i32
    %c0_i32_20 = arith.constant 0 : i32
    %41 = arith.cmpi sge, %40, %c0_i32_20 : i32
    %c16_i32_21 = arith.constant 16 : i32
    %42 = arith.cmpi slt, %40, %c16_i32_21 : i32
    %43 = arith.andi %41, %42 : i1
    %44 = arith.extui %43 : i1 to i32
    %c0_i32_22 = arith.constant 0 : i32
    %45 = arith.cmpi ne, %44, %c0_i32_22 : i32
    scf.if %45 {
      %c0_82 = arith.constant 0 : index
      %106 = arith.index_cast %40 : i32 to index
      %c0_83 = arith.constant 0 : index
      %c0_84 = arith.constant 0 : index
      %107 = vector.load %arg3[%c0_82, %106, %c0_83, %c0_84] : memref<1x16x16x4xf32, #tpu.memory_space<vmem>>, vector<1x1x16x4xf32>
      %108 = vector.shape_cast %107 : vector<1x1x16x4xf32> to vector<16x4xf32>
      %c6 = arith.constant 6 : index
      %c1_85 = arith.constant 1 : index
      %c0_86 = arith.constant 0 : index
      %109 = vector.load %arg7[%c6, %c1_85, %c0_86] : memref<10x18x4xf32, #tpu.memory_space<vmem>>, vector<1x16x4xf32>
      %110 = vector.shape_cast %109 : vector<1x16x4xf32> to vector<16x4xf32>
      %111 = vector.shape_cast %108 : vector<16x4xf32> to vector<1x16x4xf32>
      tpu.vector_store %arg7[%c6, %c1_85, %c0_86], %111 {strides = array<i32>} : memref<10x18x4xf32, #tpu.memory_space<vmem>>, vector<1x16x4xf32>,
    } else {
    }
    %c7_i32 = arith.constant 7 : i32
    %46 = arith.addi %1, %c7_i32 : i32
    %c0_i32_23 = arith.constant 0 : i32
    %47 = arith.cmpi sge, %46, %c0_i32_23 : i32
    %c16_i32_24 = arith.constant 16 : i32
    %48 = arith.cmpi slt, %46, %c16_i32_24 : i32
    %49 = arith.andi %47, %48 : i1
    %50 = arith.extui %49 : i1 to i32
    %c0_i32_25 = arith.constant 0 : i32
    %51 = arith.cmpi ne, %50, %c0_i32_25 : i32
    scf.if %51 {
      %c0_82 = arith.constant 0 : index
      %106 = arith.index_cast %46 : i32 to index
      %c0_83 = arith.constant 0 : index
      %c0_84 = arith.constant 0 : index
      %107 = vector.load %arg3[%c0_82, %106, %c0_83, %c0_84] : memref<1x16x16x4xf32, #tpu.memory_space<vmem>>, vector<1x1x16x4xf32>
      %108 = vector.shape_cast %107 : vector<1x1x16x4xf32> to vector<16x4xf32>
      %c7 = arith.constant 7 : index
      %c1_85 = arith.constant 1 : index
      %c0_86 = arith.constant 0 : index
      %109 = vector.load %arg7[%c7, %c1_85, %c0_86] : memref<10x18x4xf32, #tpu.memory_space<vmem>>, vector<1x16x4xf32>
      %110 = vector.shape_cast %109 : vector<1x16x4xf32> to vector<16x4xf32>
      %111 = vector.shape_cast %108 : vector<16x4xf32> to vector<1x16x4xf32>
      tpu.vector_store %arg7[%c7, %c1_85, %c0_86], %111 {strides = array<i32>} : memref<10x18x4xf32, #tpu.memory_space<vmem>>, vector<1x16x4xf32>,
    } else {
    }
    %c8_i32_26 = arith.constant 8 : i32
    %52 = arith.addi %1, %c8_i32_26 : i32
    %c0_i32_27 = arith.constant 0 : i32
    %53 = arith.cmpi sge, %52, %c0_i32_27 : i32
    %c16_i32_28 = arith.constant 16 : i32
    %54 = arith.cmpi slt, %52, %c16_i32_28 : i32
    %55 = arith.andi %53, %54 : i1
    %56 = arith.extui %55 : i1 to i32
    %c0_i32_29 = arith.constant 0 : i32
    %57 = arith.cmpi ne, %56, %c0_i32_29 : i32
    scf.if %57 {
      %c0_82 = arith.constant 0 : index
      %106 = arith.index_cast %52 : i32 to index
      %c0_83 = arith.constant 0 : index
      %c0_84 = arith.constant 0 : index
      %107 = vector.load %arg3[%c0_82, %106, %c0_83, %c0_84] : memref<1x16x16x4xf32, #tpu.memory_space<vmem>>, vector<1x1x16x4xf32>
      %108 = vector.shape_cast %107 : vector<1x1x16x4xf32> to vector<16x4xf32>
      %c8_85 = arith.constant 8 : index
      %c1_86 = arith.constant 1 : index
      %c0_87 = arith.constant 0 : index
      %109 = vector.load %arg7[%c8_85, %c1_86, %c0_87] : memref<10x18x4xf32, #tpu.memory_space<vmem>>, vector<1x16x4xf32>
      %110 = vector.shape_cast %109 : vector<1x16x4xf32> to vector<16x4xf32>
      %111 = vector.shape_cast %108 : vector<16x4xf32> to vector<1x16x4xf32>
      tpu.vector_store %arg7[%c8_85, %c1_86, %c0_87], %111 {strides = array<i32>} : memref<10x18x4xf32, #tpu.memory_space<vmem>>, vector<1x16x4xf32>,
    } else {
    }
    %c9_i32 = arith.constant 9 : i32
    %58 = arith.addi %1, %c9_i32 : i32
    %c0_i32_30 = arith.constant 0 : i32
    %59 = arith.cmpi sge, %58, %c0_i32_30 : i32
    %c16_i32_31 = arith.constant 16 : i32
    %60 = arith.cmpi slt, %58, %c16_i32_31 : i32
    %61 = arith.andi %59, %60 : i1
    %62 = arith.extui %61 : i1 to i32
    %c0_i32_32 = arith.constant 0 : i32
    %63 = arith.cmpi ne, %62, %c0_i32_32 : i32
    scf.if %63 {
      %c0_82 = arith.constant 0 : index
      %106 = arith.index_cast %58 : i32 to index
      %c0_83 = arith.constant 0 : index
      %c0_84 = arith.constant 0 : index
      %107 = vector.load %arg3[%c0_82, %106, %c0_83, %c0_84] : memref<1x16x16x4xf32, #tpu.memory_space<vmem>>, vector<1x1x16x4xf32>
      %108 = vector.shape_cast %107 : vector<1x1x16x4xf32> to vector<16x4xf32>
      %c9 = arith.constant 9 : index
      %c1_85 = arith.constant 1 : index
      %c0_86 = arith.constant 0 : index
      %109 = vector.load %arg7[%c9, %c1_85, %c0_86] : memref<10x18x4xf32, #tpu.memory_space<vmem>>, vector<1x16x4xf32>
      %110 = vector.shape_cast %109 : vector<1x16x4xf32> to vector<16x4xf32>
      %111 = vector.shape_cast %108 : vector<16x4xf32> to vector<1x16x4xf32>
      tpu.vector_store %arg7[%c9, %c1_85, %c0_86], %111 {strides = array<i32>} : memref<10x18x4xf32, #tpu.memory_space<vmem>>, vector<1x16x4xf32>,
    } else {
    }
    %cst_33 = arith.constant 0.000000e+00 : f32
    %64 = vector.broadcast %cst_33 : f32 to vector<128x128xf32>
    %c0_34 = arith.constant 0 : index
    %c0_35 = arith.constant 0 : index
    %65 = vector.load %arg8[%c0_34, %c0_35] : memref<128x128xf32, #tpu.memory_space<vmem>>, vector<128x128xf32>
    tpu.vector_store %arg8[%c0_34, %c0_35], %64 {strides = array<i32>} : memref<128x128xf32, #tpu.memory_space<vmem>>, vector<128x128xf32>,
    %c0_36 = arith.constant 0 : index
    %c0_37 = arith.constant 0 : index
    %c0_38 = arith.constant 0 : index
    %66 = vector.load %arg7[%c0_36, %c0_37, %c0_38] : memref<10x18x4xf32, #tpu.memory_space<vmem>>, vector<8x16x4xf32>
    %67 = vector.shape_cast %66 : vector<8x16x4xf32> to vector<128x4xf32>
    %c0_39 = arith.constant 0 : index
    %c0_40 = arith.constant 0 : index
    %68 = vector.load %arg8[%c0_39, %c0_40] : memref<128x128xf32, #tpu.memory_space<vmem>>, vector<128x4xf32>
    tpu.vector_store %arg8[%c0_39, %c0_40], %67 {strides = array<i32>} : memref<128x128xf32, #tpu.memory_space<vmem>>, vector<128x4xf32>,
    %c0_41 = arith.constant 0 : index
    %c1 = arith.constant 1 : index
    %c0_42 = arith.constant 0 : index
    %69 = vector.load %arg7[%c0_41, %c1, %c0_42] : memref<10x18x4xf32, #tpu.memory_space<vmem>>, vector<8x16x4xf32>
    %70 = vector.shape_cast %69 : vector<8x16x4xf32> to vector<128x4xf32>
    %c0_43 = arith.constant 0 : index
    %c4 = arith.constant 4 : index
    %71 = vector.load %arg8[%c0_43, %c4] : memref<128x128xf32, #tpu.memory_space<vmem>>, vector<128x4xf32>
    tpu.vector_store %arg8[%c0_43, %c4], %70 {strides = array<i32>} : memref<128x128xf32, #tpu.memory_space<vmem>>, vector<128x4xf32>,
    %c0_44 = arith.constant 0 : index
    %c2 = arith.constant 2 : index
    %c0_45 = arith.constant 0 : index
    %72 = vector.load %arg7[%c0_44, %c2, %c0_45] : memref<10x18x4xf32, #tpu.memory_space<vmem>>, vector<8x16x4xf32>
    %73 = vector.shape_cast %72 : vector<8x16x4xf32> to vector<128x4xf32>
    %c0_46 = arith.constant 0 : index
    %c8 = arith.constant 8 : index
    %74 = vector.load %arg8[%c0_46, %c8] : memref<128x128xf32, #tpu.memory_space<vmem>>, vector<128x4xf32>
    tpu.vector_store %arg8[%c0_46, %c8], %73 {strides = array<i32>} : memref<128x128xf32, #tpu.memory_space<vmem>>, vector<128x4xf32>,
    %c1_47 = arith.constant 1 : index
    %c0_48 = arith.constant 0 : index
    %c0_49 = arith.constant 0 : index
    %75 = vector.load %arg7[%c1_47, %c0_48, %c0_49] : memref<10x18x4xf32, #tpu.memory_space<vmem>>, vector<8x16x4xf32>
    %76 = vector.shape_cast %75 : vector<8x16x4xf32> to vector<128x4xf32>
    %c0_50 = arith.constant 0 : index
    %c12 = arith.constant 12 : index
    %77 = vector.load %arg8[%c0_50, %c12] : memref<128x128xf32, #tpu.memory_space<vmem>>, vector<128x4xf32>
    tpu.vector_store %arg8[%c0_50, %c12], %76 {strides = array<i32>} : memref<128x128xf32, #tpu.memory_space<vmem>>, vector<128x4xf32>,
    %c1_51 = arith.constant 1 : index
    %c1_52 = arith.constant 1 : index
    %c0_53 = arith.constant 0 : index
    %78 = vector.load %arg7[%c1_51, %c1_52, %c0_53] : memref<10x18x4xf32, #tpu.memory_space<vmem>>, vector<8x16x4xf32>
    %79 = vector.shape_cast %78 : vector<8x16x4xf32> to vector<128x4xf32>
    %c0_54 = arith.constant 0 : index
    %c16 = arith.constant 16 : index
    %80 = vector.load %arg8[%c0_54, %c16] : memref<128x128xf32, #tpu.memory_space<vmem>>, vector<128x4xf32>
    tpu.vector_store %arg8[%c0_54, %c16], %79 {strides = array<i32>} : memref<128x128xf32, #tpu.memory_space<vmem>>, vector<128x4xf32>,
    %c1_55 = arith.constant 1 : index
    %c2_56 = arith.constant 2 : index
    %c0_57 = arith.constant 0 : index
    %81 = vector.load %arg7[%c1_55, %c2_56, %c0_57] : memref<10x18x4xf32, #tpu.memory_space<vmem>>, vector<8x16x4xf32>
    %82 = vector.shape_cast %81 : vector<8x16x4xf32> to vector<128x4xf32>
    %c0_58 = arith.constant 0 : index
    %c20 = arith.constant 20 : index
    %83 = vector.load %arg8[%c0_58, %c20] : memref<128x128xf32, #tpu.memory_space<vmem>>, vector<128x4xf32>
    tpu.vector_store %arg8[%c0_58, %c20], %82 {strides = array<i32>} : memref<128x128xf32, #tpu.memory_space<vmem>>, vector<128x4xf32>,
    %c2_59 = arith.constant 2 : index
    %c0_60 = arith.constant 0 : index
    %c0_61 = arith.constant 0 : index
    %84 = vector.load %arg7[%c2_59, %c0_60, %c0_61] : memref<10x18x4xf32, #tpu.memory_space<vmem>>, vector<8x16x4xf32>
    %85 = vector.shape_cast %84 : vector<8x16x4xf32> to vector<128x4xf32>
    %c0_62 = arith.constant 0 : index
    %c24 = arith.constant 24 : index
    %86 = vector.load %arg8[%c0_62, %c24] : memref<128x128xf32, #tpu.memory_space<vmem>>, vector<128x4xf32>
    tpu.vector_store %arg8[%c0_62, %c24], %85 {strides = array<i32>} : memref<128x128xf32, #tpu.memory_space<vmem>>, vector<128x4xf32>,
    %c2_63 = arith.constant 2 : index
    %c1_64 = arith.constant 1 : index
    %c0_65 = arith.constant 0 : index
    %87 = vector.load %arg7[%c2_63, %c1_64, %c0_65] : memref<10x18x4xf32, #tpu.memory_space<vmem>>, vector<8x16x4xf32>
    %88 = vector.shape_cast %87 : vector<8x16x4xf32> to vector<128x4xf32>
    %c0_66 = arith.constant 0 : index
    %c28 = arith.constant 28 : index
    %89 = vector.load %arg8[%c0_66, %c28] : memref<128x128xf32, #tpu.memory_space<vmem>>, vector<128x4xf32>
    tpu.vector_store %arg8[%c0_66, %c28], %88 {strides = array<i32>} : memref<128x128xf32, #tpu.memory_space<vmem>>, vector<128x4xf32>,
    %c2_67 = arith.constant 2 : index
    %c2_68 = arith.constant 2 : index
    %c0_69 = arith.constant 0 : index
    %90 = vector.load %arg7[%c2_67, %c2_68, %c0_69] : memref<10x18x4xf32, #tpu.memory_space<vmem>>, vector<8x16x4xf32>
    %91 = vector.shape_cast %90 : vector<8x16x4xf32> to vector<128x4xf32>
    %c0_70 = arith.constant 0 : index
    %c32 = arith.constant 32 : index
    %92 = vector.load %arg8[%c0_70, %c32] : memref<128x128xf32, #tpu.memory_space<vmem>>, vector<128x4xf32>
    tpu.vector_store %arg8[%c0_70, %c32], %91 {strides = array<i32>} : memref<128x128xf32, #tpu.memory_space<vmem>>, vector<128x4xf32>,
    %c0_71 = arith.constant 0 : index
    %c0_72 = arith.constant 0 : index
    %93 = vector.load %arg8[%c0_71, %c0_72] : memref<128x128xf32, #tpu.memory_space<vmem>>, vector<128x128xf32>
    %c0_73 = arith.constant 0 : index
    %c0_74 = arith.constant 0 : index
    %94 = vector.load %arg4[%c0_73, %c0_74] : memref<128x128xf32, #tpu.memory_space<vmem>>, vector<128x128xf32>
    %cst_75 = arith.constant dense<0.000000e+00> : vector<128x128xf32>
    %95 = tpu.matmul %93, %94, %cst_75 {dimension_numbers = #tpu.dot_dimension_numbers<[1], [0], [0], [1], [0, 0, 1, 1], [], []>} : vector<128x128xf32>, vector<128x128xf32>, vector<128x128xf32> -> vector<128x128xf32>
    %96 = tpu.transpose %95, [1, 0] : vector<128x128xf32> -> vector<128x128xf32>
    %97 = vector.extract_strided_slice %96 {offsets = [0, 0], sizes = [8, 128], strides = [1, 1]} : vector<128x128xf32> to vector<8x128xf32>
    %c0_76 = arith.constant 0 : index
    %c0_77 = arith.constant 0 : index
    %98 = vector.load %arg5[%c0_76, %c0_77] : memref<8x1xf32, #tpu.memory_space<vmem>>, vector<8x1xf32>
    %99 = vector.broadcast %98 : vector<8x1xf32> to vector<8x128xf32>
    %100 = arith.addf %97, %99 : vector<8x128xf32>
    %cst_78 = arith.constant 0.000000e+00 : f32
    %101 = vector.broadcast %cst_78 : f32 to vector<8x128xf32>
    %102 = arith.maximumf %100, %101 : vector<8x128xf32>
    %c0_79 = arith.constant 0 : index
    %c0_80 = arith.constant 0 : index
    %c0_81 = arith.constant 0 : index
    %103 = vector.load %arg6[%c0_79, %c0_80, %c0_81] : memref<1x8x128xf32, #tpu.memory_space<vmem>>, vector<1x8x128xf32>
    %104 = vector.shape_cast %103 : vector<1x8x128xf32> to vector<8x128xf32>
    %105 = vector.shape_cast %102 : vector<8x128xf32> to vector<1x8x128xf32>
    tpu.vector_store %arg6[%c0_79, %c0_80, %c0_81], %105 {strides = array<i32>} : memref<1x8x128xf32, #tpu.memory_space<vmem>>, vector<1x8x128xf32>,
    return
  }
  func.func @transform_0(%arg0: i32, %arg1: i32, %arg2: i32) -> (i32, i32, i32, i32) {
    %c0_i32 = arith.constant 0 : i32
    %c0_i32_0 = arith.constant 0 : i32
    %c0_i32_1 = arith.constant 0 : i32
    %c0_i32_2 = arith.constant 0 : i32
    return %arg0, %c0_i32, %c0_i32_0, %c0_i32_1 : i32, i32, i32, i32
  }
  func.func @transform_1(%arg0: i32, %arg1: i32, %arg2: i32) -> (i32, i32) {
    %c0_i32 = arith.constant 0 : i32
    %c0_i32_0 = arith.constant 0 : i32
    return %c0_i32, %arg1 : i32, i32
  }
  func.func @transform_2(%arg0: i32, %arg1: i32, %arg2: i32) -> (i32, i32) {
    %c0_i32 = arith.constant 0 : i32
    %c0_i32_0 = arith.constant 0 : i32
    return %arg1, %c0_i32 : i32, i32
  }
  func.func @transform_3(%arg0: i32, %arg1: i32, %arg2: i32) -> (i32, i32, i32) {
    %c0_i32 = arith.constant 0 : i32
    return %arg0, %arg1, %arg2 : i32, i32, i32
  }
}

</mosaic_0001>

<bundles_post_ra>
// kernel: tpu_custom_call.1
= control target key start
LH: loop header
LB: loop body
LE: loop exit
PB: predicated region body
PF: predicated region fallthrough
CT: control target
= control target key end

     0   :  { %8 = vsyncpa [#allocation5], 0  ;;  %s2670_s0 = inlined_call_operand.vmem [shape: f32[2,16,16,4], index: 0, kind: input, shape index: {}]   ;;  %s2671_s1 = inlined_call_operand.vmem [shape: f32[128,128], index: 1, kind: input, shape index: {}]   ;;  %s2672_s2 = inlined_call_operand.vmem [shape: f32[8,1], index: 2, kind: input, shape index: {}]   ;;  %s2673_s3 = inlined_call_operand.hbm [shape: f32[2,8,256], index: 3, kind: output, shape index: {}]  }
   0x1   :  { %10 = vsyncpa [#allocation5 + $0x1], 0  ;;  %s2008_s12 = smov 0   ;;  %s2010_s13 = smov 0  }
   0x2   :  { %s2012_s14 = smov 0   ;;  %s2014_s15 = smov 0  }
   0x3   :  { %s2016_s16 = smov 0   ;;  %s2018_s17 = smov 0  }
   0x4   :  { %s2020_s18 = smov 0   ;;  %s2022_s19 = smov 0  }
   0x5 LB: > { %s1602_s20 = sadd.s32 4294967295, %s1975_s19   ;;  %s1603_s21 = sadd.s32 4294967294, %s1975_s19   ;;  %s1975_s19 = sphi %s2022_s19, %s16_s19   ;;  %s1971_s18 = sphi %s2020_s18, %s2684_s18   ;;  %s1967_s17 = sphi %s2018_s17, %s2683_s17   ;;  %s1963_s16 = sphi %s2016_s16, %s2682_s16   ;;  %s1959_s15 = sphi %s2014_s15, %s2681_s15   ;;  %s1955_s14 = sphi %s2012_s14, %s2680_s14   ;;  %s1951_s13 = sphi %s2010_s13, %s2679_s13   ;;  %s1947_s12 = sphi %s2008_s12, %s2678_s12  }
   0x6   : > { %s28_s22 = sadd.s32 1, %s1967_s17  ;;  %s35_s23 = sadd.s32 1, %s1971_s18 }
   0x7   : > { %p29_p0 = scmp.ge.s32.totalorder %s28_s22, 2  ;;  %p134_p1 = scmp.ne.s32.totalorder %s1955_s14, %s1951_s13 }
   0x8   : > { %p135_p2 = scmp.eq.s32.totalorder %s1602_s20, 3  ;;  %p140_p5 = scmp.ne.s32.totalorder %s1951_s13, %s1947_s12 }
   0x9   : > { %s2686_s22 = smov (%p29_p0, %s28_s22), 0  ;;  %s2688_s23 = smov (!%p29_p0, %s35_s23), %s1971_s18 }
   0xa   : > { %s120_s24 = ssub.s32 %s1967_s17, %s2686_s22  ;;  %p2059_p3 = por %p135_p2, %p134_p1 }
   0xb   : > { %p37_p4 = scmp.ge.s32.totalorder %s2688_s23, 2  ;;  %p141_p6 = scmp.eq.s32.totalorder %s1603_s21, 3 }
   0xc   : > { %p1608_p7 = scmp.ge.s32.totalorder %s1975_s19, 1  ;;  %p181_p9 = scmp.lt.s32.totalorder %s1975_s19, 5 }
   0xd   : > { %s2690_s23 = smov (%p37_p4, %s2688_s23), 0  ;;  %p2068_p8 = por %p141_p6, %p140_p5 }
   0xe   : > { %s117_s27 = ssub.s32 %s1971_s18, %s2690_s23  ;;  %s124_s28 = sadd.s32 1, %s1955_s14 }
   0xf   : > { %s121_s29 = sor.u32 %s120_s24, %s117_s27  ;;  %p182_p10 = pnand %p1608_p7, %p181_p9 }
  0x10   : > { %p122_p11 = scmp.eq.s32.totalorder %s121_s29, 0  ;;  %s2674_s4 = sand.u32 (!%p182_p10), 1, %s1951_s13   ;;  %vm228_vm0 = vcmask (!%p182_p10), 31744   ;;  %vm231_vm1 = vcmask (!%p182_p10), 25600   ;;  %v1977_v0 = vmov (!%p182_p10), 0.0  }
  0x11   : > { %185 = sbr.rel (%p182_p10) target bundleno = 823 (0x337), region = 32  ;;  %p213_p12 = scmp.lt.s32.totalorder (!%p182_p10), %s1963_s16, 1  ;;  %229 = vst.msk [vmem:[#allocation2] sm:$0xff] (!%p182_p10), %vm228_vm0, %v1977_v0  ;;  %230 = vst.msk [vmem:[#allocation2 + $0x8] sm:$0xff] (!%p182_p10), %vm228_vm0, %v1977_v0 }
  0x12   : > { %s2077_s30 = scalar_select %p122_p11, %s1955_s14, %s124_s28  }
  0x13   : > { %s2083_s5 = sshll.u32 (!%p182_p10), %s2674_s4, 3  ;;  %s2086_s6 = sshll.u32 (!%p182_p10), %s1959_s15, 3  ;;  %233 = vst.msk [vmem:[#allocation2 + $0x18] sm:$0xff] (!%p182_p10), %vm228_vm0, %v1977_v0  ;;  %234 = vst.msk [vmem:[#allocation2 + $0x20] sm:$0xff] (!%p182_p10), %vm228_vm0, %v1977_v0 }
  0x14   : > { %236 = vst.msk [vmem:[#allocation2 + $0x30] sm:$0xff] (!%p182_p10), %vm228_vm0, %v1977_v0  ;;  %237 = vst.msk [vmem:[#allocation2 + $0x38] sm:$0xff] (!%p182_p10), %vm228_vm0, %v1977_v0  ;;  %s1613_s7 = sadd.s32 (!%p182_p10), 4294967295, %s2086_s6  ;;  %s212_s21 = scalar_lea.vmem (!%p182_p10), [#allocation4], %s2083_s5 }
  0x15   : > { %239 = vst.msk [vmem:[#allocation2 + $0x48] sm:$0xff] (!%p182_p10), %vm228_vm0, %v1977_v0  ;;  %240 = vst.msk [vmem:[#allocation2 + $0x50] sm:$0xff] (!%p182_p10), %vm228_vm0, %v1977_v0  ;;  %p260_p13 = scmp.ge.s32.totalorder (!%p182_p10), %s1613_s7, 0  ;;  %p261_p0 = scmp.lt.s32.totalorder (!%p182_p10), %s1613_s7, 16 }
  0x16   : > { %242 = vst.msk [vmem:[#allocation2 + $0x60] sm:$0xff] (!%p182_p10), %vm228_vm0, %v1977_v0  ;;  %243 = vst.msk [vmem:[#allocation2 + $0x68] sm:$0xff] (!%p182_p10), %vm228_vm0, %v1977_v0 }
  0x17   : > { %245 = vst.msk [vmem:[#allocation2 + $0x78] sm:$0xff] (!%p182_p10), %vm228_vm0, %v1977_v0  ;;  %246 = vst.msk [vmem:[#allocation2 + $0x80] sm:$0xff] (!%p182_p10), %vm228_vm0, %v1977_v0  ;;  %p262_p1 = pnand (!%p182_p10), %p261_p0, %p260_p13 }
  0x18   : > { %248 = vst.msk [vmem:[#allocation2 + $0x90] sm:$0xff] %vm228_vm0, %v1977_v0  ;;  %249 = vst.msk [vmem:[#allocation2 + $0x98] sm:$0xff] %vm228_vm0, %v1977_v0  ;;  %s214_s8 = scalar_select %p213_p12, %s1963_s16, 1 }
  0x19   : > { %251 = vst.msk [vmem:[#allocation2 + $0xa8] sm:$0xff] %vm228_vm0, %v1977_v0  ;;  %252 = vst.msk [vmem:[#allocation2 + $0xb0] sm:$0xff] %vm228_vm0, %v1977_v0  ;;  %s1614_s24 = sshll.u32 (!%p262_p1), %s1613_s7, 4 }
  0x1a   : > { %254 = vst.msk [vmem:[#allocation2 + $0xc0] sm:$0xff] %vm228_vm0, %v1977_v0  ;;  %255 = vst.msk [vmem:[#allocation2 + $0xc8] sm:$0xff] %vm228_vm0, %v1977_v0  ;;  %s1653_s9 = sshll.u32 %s214_s8, 8  ;;  %265 = sbr.rel (%p262_p1) target bundleno = 34 (0x22), region = 36 }
  0x1b   : > { %257 = vst.msk [vmem:[#allocation2 + $0xd8] sm:$0xff] %vm228_vm0, %v1977_v0  ;;  %258 = vst.msk [vmem:[#allocation2 + $0xe0] sm:$0xff] %vm228_vm0, %v1977_v0  ;;  %s2155_s20 = scalar_lea.vmem %s2670_s0, %s1653_s9 }
  0x1c   : > { %232 = vst.msk [vmem:[#allocation2 + $0x10] sm:$0x3] %vm231_vm1, %v1977_v0  ;;  %235 = vst.msk [vmem:[#allocation2 + $0x28] sm:$0x3] %vm231_vm1, %v1977_v0  ;;  %s267_s27 = scalar_lea.vmem (!%p262_p1), %s2155_s20, %s1614_s24 }
  0x1d   : > { %238 = vst.msk [vmem:[#allocation2 + $0x40] sm:$0x3] %vm231_vm1, %v1977_v0  ;;  %241 = vst.msk [vmem:[#allocation2 + $0x58] sm:$0x3] %vm231_vm1, %v1977_v0  ;;  %v268_v1 = vld [vmem:[%s267_s27] sm:$0xff] (!%p262_p1)  ;;  %v269_v2 = vld [vmem:[%s267_s27 + $0x8] sm:$0xff] (!%p262_p1) }
  0x1e   : > { %244 = vst.msk [vmem:[#allocation2 + $0x70] sm:$0x3] %vm231_vm1, %v1977_v0  ;;  %247 = vst.msk [vmem:[#allocation2 + $0x88] sm:$0x3] %vm231_vm1, %v1977_v0 }
  0x1f   : > { %250 = vst.msk [vmem:[#allocation2 + $0xa0] sm:$0x3] %vm231_vm1, %v1977_v0  ;;  %253 = vst.msk [vmem:[#allocation2 + $0xb8] sm:$0x3] %vm231_vm1, %v1977_v0 }
  0x20   : > { %256 = vst.msk [vmem:[#allocation2 + $0xd0] sm:$0x3] %vm231_vm1, %v1977_v0  ;;  %259 = vst.msk [vmem:[#allocation2 + $0xe8] sm:$0x3] %vm231_vm1, %v1977_v0 }
  0x21   : > { %270 = vst.msk [vmem:[#allocation2 + $0x1] sm:$0xff] %vm228_vm0, %v268_v1  ;;  %271 = vst.msk [vmem:[#allocation2 + $0x9] sm:$0xff] %vm228_vm0, %v269_v2 }
  0x22 PF: > { %p272_p2 = scmp.ge.s32.totalorder %s2086_s6, 0  ;;  %p273_p4 = scmp.lt.s32.totalorder %s2086_s6, 16 }
  0x24   : > { %p274_p5 = pnand %p273_p4, %p272_p2 }
  0x25   : > { %s1654_s28 = sshll.u32 (!%p274_p5), %s1959_s15, 7 }
  0x26   : > { %277 = sbr.rel (%p274_p5) target bundleno = 45 (0x2d), region = 40  ;;  %s279_s29 = scalar_lea.vmem (!%p274_p5), %s2155_s20, %s1654_s28 }
  0x27   : > { %v280_v3 = vld [vmem:[%s279_s29] sm:$0xff] (!%p274_p5)  ;;  %v281_v4 = vld [vmem:[%s279_s29 + $0x8] sm:$0xff] (!%p274_p5) }
  0x28   : > { %283 = vst.msk [vmem:[#allocation2 + $0x19] sm:$0xff] (!%p274_p5), %vm228_vm0, %v280_v3  ;;  %284 = vst.msk [vmem:[#allocation2 + $0x21] sm:$0xff] (!%p274_p5), %vm228_vm0, %v281_v4 }
  0x2d PF: > { %s285_s7 = sadd.s32 1, %s2086_s6 }
  0x2e   : > { %p286_p6 = scmp.ge.s32.totalorder %s285_s7, 0  ;;  %p287_p7 = scmp.lt.s32.totalorder %s285_s7, 16 }
  0x30   : > { %p288_p9 = pnand %p287_p7, %p286_p6 }
  0x31   : > { %s1655_s8 = sshll.u32 (!%p288_p9), %s1959_s15, 7 }
  0x32   : > { %291 = sbr.rel (%p288_p9) target bundleno = 57 (0x39), region = 44  ;;  %s1507_s9 = scalar_lea.vmem (!%p288_p9), %s2155_s20, %s1655_s8 }
  0x33   : > { %v1618_v5 = vld [vmem:[%s1507_s9 + $0x10] sm:$0xff] (!%p288_p9)  ;;  %v1619_v6 = vld [vmem:[%s1507_s9 + $0x18] sm:$0xff] (!%p288_p9) }
  0x34   : > { %297 = vst.msk [vmem:[#allocation2 + $0x31] sm:$0xff] (!%p288_p9), %vm228_vm0, %v1618_v5  ;;  %298 = vst.msk [vmem:[#allocation2 + $0x39] sm:$0xff] (!%p288_p9), %vm228_vm0, %v1619_v6 }
  0x39 PF: > { %s299_s10 = sadd.s32 2, %s2086_s6 }
  0x3a   : > { %p300_p10 = scmp.ge.s32.totalorder %s299_s10, 0  ;;  %p301_p11 = scmp.lt.s32.totalorder %s299_s10, 16 }
  0x3c   : > { %p302_p12 = pnand %p301_p11, %p300_p10 }
  0x3d   : > { %s1656_s11 = sshll.u32 (!%p302_p12), %s1959_s15, 7 }
  0x3e   : > { %305 = sbr.rel (%p302_p12) target bundleno = 69 (0x45), region = 48  ;;  %s1511_s24 = scalar_lea.vmem (!%p302_p12), %s2155_s20, %s1656_s11 }
  0x3f   : > { %v1622_v7 = vld [vmem:[%s1511_s24 + $0x20] sm:$0xff] (!%p302_p12)  ;;  %v1623_v8 = vld [vmem:[%s1511_s24 + $0x28] sm:$0xff] (!%p302_p12) }
  0x40   : > { %311 = vst.msk [vmem:[#allocation2 + $0x49] sm:$0xff] (!%p302_p12), %vm228_vm0, %v1622_v7  ;;  %312 = vst.msk [vmem:[#allocation2 + $0x51] sm:$0xff] (!%p302_p12), %vm228_vm0, %v1623_v8 }
  0x45 PF: > { %s313_s27 = sadd.s32 3, %s2086_s6 }
  0x46   : > { %p314_p13 = scmp.ge.s32.totalorder %s313_s27, 0  ;;  %p315_p0 = scmp.lt.s32.totalorder %s313_s27, 16 }
  0x48   : > { %p316_p1 = pnand %p315_p0, %p314_p13 }
  0x49   : > { %s1657_s28 = sshll.u32 (!%p316_p1), %s1959_s15, 7 }
  0x4a   : > { %319 = sbr.rel (%p316_p1) target bundleno = 81 (0x51), region = 52  ;;  %s1515_s29 = scalar_lea.vmem (!%p316_p1), %s2155_s20, %s1657_s28 }
  0x4b   : > { %v1626_v9 = vld [vmem:[%s1515_s29 + $0x30] sm:$0xff] (!%p316_p1)  ;;  %v1627_v10 = vld [vmem:[%s1515_s29 + $0x38] sm:$0xff] (!%p316_p1) }
  0x4c   : > { %325 = vst.msk [vmem:[#allocation2 + $0x61] sm:$0xff] (!%p316_p1), %vm228_vm0, %v1626_v9  ;;  %326 = vst.msk [vmem:[#allocation2 + $0x69] sm:$0xff] (!%p316_p1), %vm228_vm0, %v1627_v10 }
  0x51 PF: > { %s327_s7 = sadd.s32 4, %s2086_s6 }
  0x52   : > { %p328_p2 = scmp.ge.s32.totalorder %s327_s7, 0  ;;  %p329_p4 = scmp.lt.s32.totalorder %s327_s7, 16 }
  0x54   : > { %p330_p5 = pnand %p329_p4, %p328_p2 }
  0x55   : > { %s1658_s8 = sshll.u32 (!%p330_p5), %s1959_s15, 7 }
  0x56   : > { %333 = sbr.rel (%p330_p5) target bundleno = 93 (0x5d), region = 56  ;;  %s1519_s9 = scalar_lea.vmem (!%p330_p5), %s2155_s20, %s1658_s8 }
  0x57   : > { %v1630_v11 = vld [vmem:[%s1519_s9 + $0x40] sm:$0xff] (!%p330_p5)  ;;  %v1631_v12 = vld [vmem:[%s1519_s9 + $0x48] sm:$0xff] (!%p330_p5) }
  0x58   : > { %339 = vst.msk [vmem:[#allocation2 + $0x79] sm:$0xff] (!%p330_p5), %vm228_vm0, %v1630_v11  ;;  %340 = vst.msk [vmem:[#allocation2 + $0x81] sm:$0xff] (!%p330_p5), %vm228_vm0, %v1631_v12 }
  0x5d PF: > { %s341_s10 = sadd.s32 5, %s2086_s6 }
  0x5e   : > { %p342_p6 = scmp.ge.s32.totalorder %s341_s10, 0  ;;  %p343_p7 = scmp.lt.s32.totalorder %s341_s10, 16 }
  0x60   : > { %p344_p9 = pnand %p343_p7, %p342_p6 }
  0x61   : > { %s1659_s11 = sshll.u32 (!%p344_p9), %s1959_s15, 7 }
  0x62   : > { %347 = sbr.rel (%p344_p9) target bundleno = 105 (0x69), region = 60  ;;  %s1523_s24 = scalar_lea.vmem (!%p344_p9), %s2155_s20, %s1659_s11 }
  0x63   : > { %v1634_v13 = vld [vmem:[%s1523_s24 + $0x50] sm:$0xff] (!%p344_p9)  ;;  %v1635_v14 = vld [vmem:[%s1523_s24 + $0x58] sm:$0xff] (!%p344_p9) }
  0x64   : > { %353 = vst.msk [vmem:[#allocation2 + $0x91] sm:$0xff] (!%p344_p9), %vm228_vm0, %v1634_v13  ;;  %354 = vst.msk [vmem:[#allocation2 + $0x99] sm:$0xff] (!%p344_p9), %vm228_vm0, %v1635_v14 }
  0x69 PF: > { %s355_s27 = sadd.s32 6, %s2086_s6 }
  0x6a   : > { %p356_p10 = scmp.ge.s32.totalorder %s355_s27, 0  ;;  %p357_p11 = scmp.lt.s32.totalorder %s355_s27, 16 }
  0x6c   : > { %p358_p12 = pnand %p357_p11, %p356_p10 }
  0x6d   : > { %s1660_s28 = sshll.u32 (!%p358_p12), %s1959_s15, 7 }
  0x6e   : > { %361 = sbr.rel (%p358_p12) target bundleno = 117 (0x75), region = 64  ;;  %s1527_s29 = scalar_lea.vmem (!%p358_p12), %s2155_s20, %s1660_s28 }
  0x6f   : > { %v1638_v15 = vld [vmem:[%s1527_s29 + $0x60] sm:$0xff] (!%p358_p12)  ;;  %v1639_v16 = vld [vmem:[%s1527_s29 + $0x68] sm:$0xff] (!%p358_p12) }
  0x70   : > { %367 = vst.msk [vmem:[#allocation2 + $0xa9] sm:$0xff] (!%p358_p12), %vm228_vm0, %v1638_v15  ;;  %368 = vst.msk [vmem:[#allocation2 + $0xb1] sm:$0xff] (!%p358_p12), %vm228_vm0, %v1639_v16 }
  0x75 PF: > { %s369_s7 = sadd.s32 7, %s2086_s6 }
  0x76   : > { %p370_p13 = scmp.ge.s32.totalorder %s369_s7, 0  ;;  %p371_p0 = scmp.lt.s32.totalorder %s369_s7, 16 }
  0x78   : > { %p372_p1 = pnand %p371_p0, %p370_p13 }
  0x79   : > { %s1661_s8 = sshll.u32 (!%p372_p1), %s1959_s15, 7 }
  0x7a   : > { %375 = sbr.rel (%p372_p1) target bundleno = 129 (0x81), region = 68  ;;  %s1531_s9 = scalar_lea.vmem (!%p372_p1), %s2155_s20, %s1661_s8 }
  0x7b   : > { %v1642_v17 = vld [vmem:[%s1531_s9 + $0x70] sm:$0xff] (!%p372_p1)  ;;  %v1643_v18 = vld [vmem:[%s1531_s9 + $0x78] sm:$0xff] (!%p372_p1) }
  0x7c   : > { %381 = vst.msk [vmem:[#allocation2 + $0xc1] sm:$0xff] (!%p372_p1), %vm228_vm0, %v1642_v17  ;;  %382 = vst.msk [vmem:[#allocation2 + $0xc9] sm:$0xff] (!%p372_p1), %vm228_vm0, %v1643_v18 }
  0x81 PF: > { %s383_s10 = sadd.s32 8, %s2086_s6 }
  0x82   : > { %p384_p2 = scmp.ge.s32.totalorder %s383_s10, 0  ;;  %p385_p4 = scmp.lt.s32.totalorder %s383_s10, 16 }
  0x84   : > { %p386_p5 = pnand %p385_p4, %p384_p2 }
  0x85   : > { %s1662_s11 = sshll.u32 (!%p386_p5), %s1959_s15, 7 }
  0x86   : > { %389 = sbr.rel (%p386_p5) target bundleno = 141 (0x8d), region = 72  ;;  %s1535_s24 = scalar_lea.vmem (!%p386_p5), %s2155_s20, %s1662_s11 }
  0x87   : > { %v1646_v19 = vld [vmem:[%s1535_s24 + $0x80] sm:$0xff] (!%p386_p5)  ;;  %v1647_v20 = vld [vmem:[%s1535_s24 + $0x88] sm:$0xff] (!%p386_p5) }
  0x88   : > { %395 = vst.msk [vmem:[#allocation2 + $0xd9] sm:$0xff] (!%p386_p5), %vm228_vm0, %v1646_v19  ;;  %396 = vst.msk [vmem:[#allocation2 + $0xe1] sm:$0xff] (!%p386_p5), %vm228_vm0, %v1647_v20 }
  0x8d PF: > { %v542_v21 = vld [vmem:[#allocation2 + $0x2] sm:$0xff]  ;;  %397 = vst [vmem:[#allocation3] sm:$0xff] %v1977_v0  ;;  %398 = vst [vmem:[#allocation3 + $0x8] sm:$0xff] %v1977_v0  ;;  %s1978_s6 = smov 8   ;;  %s1979_s20 = smov 4   ;;  %v640_v24 = vld [vmem:[#allocation2 + $0x18] sm:$0xff] }
  0x8e   : > { %v445_v22 = vld [vmem:[#allocation2 + $0x1] sm:$0xff]  ;;  %399 = vst [vmem:[#allocation3 + $0x10] sm:$0xff] %v1977_v0  ;;  %400 = vst [vmem:[#allocation3 + $0x18] sm:$0xff] %v1977_v0  ;;  %574 = vrot.lane.b32.xlu1 %v542_v21, %s1978_s6  ;;  %v543_v25 = vld [vmem:[#allocation2 + $0xa] sm:$0xff]  ;;  %s1980_s27 = smov 12   ;;  %s1981_s9 = smov 16  }
  0x8f   : > { %401 = vst [vmem:[#allocation3 + $0x20] sm:$0xff] %v1977_v0  ;;  %402 = vst [vmem:[#allocation3 + $0x28] sm:$0xff] %v1977_v0  ;;  %477 = vrot.lane.b32.xlu0 %v445_v22, %s1979_s20  ;;  %v641_v23 = vld [vmem:[#allocation2 + $0x20] sm:$0xff]  ;;  %v446_v26 = vld [vmem:[#allocation2 + $0x9] sm:$0xff]  ;;  %s1982_s29 = smov 20   ;;  %s1983_s8 = smov 24  }
  0x90   : > { %403 = vst [vmem:[#allocation3 + $0x30] sm:$0xff] %v1977_v0  ;;  %404 = vst [vmem:[#allocation3 + $0x38] sm:$0xff] %v1977_v0  ;;  %v2227_v27 = vld [vmem:[#allocation2 + $0x30] sm:$0xff]  ;;  %v2229_v28 = vld [vmem:[#allocation2 + $0x38] sm:$0xff]  ;;  %s1984_s4 = smov 28   ;;  %s1985_s10 = smov 32  }
  0x91   : > { %405 = vst [vmem:[#allocation3 + $0x40] sm:$0xff] %v1977_v0  ;;  %406 = vst [vmem:[#allocation3 + $0x48] sm:$0xff] %v1977_v0  ;;  %v2235_v29 = vld [vmem:[#allocation2 + $0x48] sm:$0xff]  ;;  %v2239_v30 = vld [vmem:[#allocation2 + $0x50] sm:$0xff]  ;;  %vm525_vm2 = vcmask 64544   ;;  %vm622_vm3 = vcmask 97344  }
  0x92   : > { %407 = vst [vmem:[#allocation3 + $0x50] sm:$0xff] %v1977_v0  ;;  %408 = vst [vmem:[#allocation3 + $0x58] sm:$0xff] %v1977_v0  ;;  %576 = vrot.lane.b32.xlu1 %v543_v25, %s1978_s6  ;;  %v2243_v31 = vld [vmem:[#allocation2 + $0x60] sm:$0xff]  ;;  %v2247_v32 = vld [vmem:[#allocation2 + $0x68] sm:$0xff]  ;;  %vm720_vm4 = vcmask 130144   ;;  %vm817_vm5 = vcmask 162944  }
  0x93   : > { %409 = vst [vmem:[#allocation3 + $0x60] sm:$0xff] %v1977_v0  ;;  %410 = vst [vmem:[#allocation3 + $0x68] sm:$0xff] %v1977_v0  ;;  %479 = vrot.lane.b32.xlu0 %v446_v26, %s1979_s20  ;;  %v413_v33 = vld [vmem:[#allocation2] sm:$0xff]  ;;  %v414_v34 = vld [vmem:[#allocation2 + $0x8] sm:$0xff]  ;;  %vm914_vm6 = vcmask 195744   ;;  %vm1012_vm7 = vcmask 228544  }
  0x94   : > { %411 = vst [vmem:[#allocation3 + $0x70] sm:$0xff] %v1977_v0  ;;  %412 = vst [vmem:[#allocation3 + $0x78] sm:$0xff] %v1977_v0  ;;  %v447_v35 = vld [vmem:[#allocation2 + $0x19] sm:$0xff]  ;;  %v1240_v39 = vld [vmem:[%s2671_s1 + $0x8] sm:$0xff]  ;;  %vm1109_vm8 = vcmask 261344   ;;  %vm1206_vm9 = vcmask 294144  }
  0x95   : > { %431 = vst.msk [vmem:[#allocation3 + $0x10] sm:$0xff] %vm228_vm0, %v640_v24  ;;  %432 = vst.msk [vmem:[#allocation3 + $0x18] sm:$0xff] %vm228_vm0, %v641_v23  ;;  %v2257_v36 = vld [vmem:[#allocation2 + $0x78] sm:$0xff]  ;;  %v2259_v37 = vld [vmem:[#allocation2 + $0x80] sm:$0xff]  ;;  %s1987_s7 = smov [#allocation4]  }
  0x96   : > { %433 = vst.msk [vmem:[#allocation3 + $0x20] sm:$0xff] %vm228_vm0, %v2227_v27  ;;  %434 = vst.msk [vmem:[#allocation3 + $0x28] sm:$0xff] %vm228_vm0, %v2229_v28  ;;  %674 = vrot.lane.b32.xlu1 %v641_v23, %s1980_s27  ;;  %v1239_v38 = vld [vmem:[%s2671_s1] sm:$0xff]  ;;  %v1241_v41 = vld [vmem:[%s2671_s1 + $0x10] sm:$0xff] }
  0x97   : > { %435 = vst.msk [vmem:[#allocation3 + $0x30] sm:$0xff] %vm228_vm0, %v2235_v29  ;;  %436 = vst.msk [vmem:[#allocation3 + $0x38] sm:$0xff] %vm228_vm0, %v2239_v30  ;;  %672 = vrot.lane.b32.xlu0 %v640_v24, %s1980_s27  ;;  %v1751_v40 = vpack.c.bf16 %v1240_v39, %v1239_v38  ;;  %v1242_v42 = vld [vmem:[%s2671_s1 + $0x18] sm:$0xff]  ;;  %v738_v44 = vld [vmem:[#allocation2 + $0x21] sm:$0xff] }
  0x98   : > { %437 = vst.msk [vmem:[#allocation3 + $0x40] sm:$0xff] %vm228_vm0, %v2243_v31  ;;  %438 = vst.msk [vmem:[#allocation3 + $0x48] sm:$0xff] %vm228_vm0, %v2247_v32  ;;  %v834_v43 = vld [vmem:[#allocation2 + $0x1a] sm:$0xff]  ;;  %v1755_v45 = vpack.c.bf16 %v1242_v42, %v1241_v41  ;;  %v1244_v47 = vld [vmem:[%s2671_s1 + $0x28] sm:$0xff] }
  0x99   : > { %429 = vst.msk [vmem:[#allocation3] sm:$0xff] %vm228_vm0, %v413_v33  ;;  %430 = vst.msk [vmem:[#allocation3 + $0x8] sm:$0xff] %vm228_vm0, %v414_v34  ;;  %1752 = vmatprep.subr.bf16.mxu0 %v1751_v40  ;;  %1783 = vmatprep.subr.bf16.mxu1 %v1751_v40  ;;  %v1243_v46 = vld [vmem:[%s2671_s1 + $0x20] sm:$0xff]  ;;  %v1245_v49 = vld [vmem:[%s2671_s1 + $0x30] sm:$0xff] }
  0x9a   : > { %439 = vst.msk [vmem:[#allocation3 + $0x50] sm:$0xff] %vm228_vm0, %v2257_v36  ;;  %440 = vst.msk [vmem:[#allocation3 + $0x58] sm:$0xff] %vm228_vm0, %v2259_v37  ;;  %481 = vrot.lane.b32.xlu1 %v447_v35, %s1979_s20  ;;  %1754 = vmatpush3.bf16.msra.mxu0 %v1751_v40  ;;  %v1759_v48 = vpack.c.bf16 %v1244_v47, %v1243_v46  ;;  %v1246_v50 = vld [vmem:[%s2671_s1 + $0x38] sm:$0xff]  ;;  %v835_v51 = vld [vmem:[#allocation2 + $0x22] sm:$0xff] }
  0x9b   : > { %769 = vrot.lane.b32.xlu0 %v447_v35, %s1981_s9  ;;  %1791 = vmatpush3.bf16.msra.mxu1 %v1751_v40  ;;  %v1763_v52 = vpack.c.bf16 %v1246_v50, %v1245_v49  ;;  %v2295_v53 = vld [vmem:[#allocation2 + $0x90] sm:$0xff]  ;;  %v1247_v54 = vld [vmem:[%s2671_s1 + $0x40] sm:$0xff]  ;;  %v1248_v55 = vld [vmem:[%s2671_s1 + $0x48] sm:$0xff] }
  0x9c   : > { %1756 = vmatprep.subr.bf16.mxu0 %v1755_v45  ;;  %1784 = vmatprep.subr.bf16.mxu1 %v1755_v45  ;;  %441 = vst.msk [vmem:[#allocation3 + $0x60] sm:$0xff] %vm228_vm0, %v2295_v53  ;;  %v1767_v56 = vpack.c.bf16 %v1248_v55, %v1247_v54  ;;  %v1249_v57 = vld [vmem:[%s2671_s1 + $0x50] sm:$0xff]  ;;  %v1250_v58 = vld [vmem:[%s2671_s1 + $0x58] sm:$0xff]  ;;  %v1251_v62 = vld [vmem:[%s2671_s1 + $0x60] sm:$0xff] }
  0x9d   : > { %v1029_v59 = vld [vmem:[#allocation2 + $0x31] sm:$0xff]  ;;  %v1771_v60 = vpack.c.bf16 %v1250_v58, %v1249_v57  ;;  %v1252_v63 = vld [vmem:[%s2671_s1 + $0x68] sm:$0xff]  ;;  %v1030_v4 = vld [vmem:[#allocation2 + $0x39] sm:$0xff] }
  0x9e   : > { %866 = vrot.lane.b32.xlu1 %v834_v43, %s1982_s29  ;;  %1758 = vmatpush3.bf16.msra.mxu0 %v1755_v45  ;;  %v2317_v61 = vld [vmem:[#allocation2 + $0x98] sm:$0xff]  ;;  %v1775_v0 = vpack.c.bf16 %v1252_v63, %v1251_v62  ;;  %v1253_v1 = vld [vmem:[%s2671_s1 + $0x70] sm:$0xff]  ;;  %v2347_v7 = vld [vmem:[#allocation2 + $0xa8] sm:$0xff] }
  0x9f   : > { %771 = vrot.lane.b32.xlu0 %v738_v44, %s1981_s9  ;;  %1792 = vmatpush3.bf16.msra.mxu1 %v1755_v45  ;;  %442 = vst.msk [vmem:[#allocation3 + $0x68] sm:$0xff] %vm228_vm0, %v2317_v61  ;;  %v1254_v2 = vld [vmem:[%s2671_s1 + $0x78] sm:$0xff]  ;;  %443 = vst.msk [vmem:[#allocation3 + $0x70] sm:$0xff] %vm228_vm0, %v2347_v7  ;;  %v1031_v8 = vld [vmem:[#allocation2 + $0x49] sm:$0xff] }
  0xa0   : > { %1760 = vmatprep.subr.bf16.mxu0 %v1759_v48  ;;  %1785 = vmatprep.subr.bf16.mxu1 %v1759_v48  ;;  %v1126_v3 = vld [vmem:[#allocation2 + $0x32] sm:$0xff]  ;;  %v1779_v5 = vpack.c.bf16 %v1254_v2, %v1253_v1  ;;  %v1127_v6 = vld [vmem:[#allocation2 + $0x3a] sm:$0xff]  ;;  %v1128_v10 = vld [vmem:[#allocation2 + $0x4a] sm:$0xff] }
  0xa1   : > { %v2357_v9 = vld [vmem:[#allocation2 + $0xb0] sm:$0xff]  ;;  %v1033_v13 = vld [vmem:[#allocation2 + $0x61] sm:$0xff]  ;;  %v1035_v23 = vld [vmem:[#allocation2 + $0x79] sm:$0xff] }
  0xa2   : > { %578 = vrot.lane.b32.xlu1 %v834_v43, %s1978_s6  ;;  %1762 = vmatpush3.bf16.msra.mxu0 %v1759_v48  ;;  %444 = vst.msk [vmem:[#allocation3 + $0x78] sm:$0xff] %vm228_vm0, %v2357_v9  ;;  %v1032_v11 = vld [vmem:[#allocation2 + $0x51] sm:$0xff]  ;;  %v1130_v14 = vld [vmem:[#allocation2 + $0x62] sm:$0xff]  ;;  %v1038_v50 = vld [vmem:[#allocation2 + $0x99] sm:$0xff] }
  0xa3   : > { %483 = vrot.lane.b32.xlu0 %v738_v44, %s1979_s20  ;;  %1793 = vmatpush3.bf16.msra.mxu1 %v1759_v48  ;;  %v1129_v12 = vld [vmem:[#allocation2 + $0x52] sm:$0xff]  ;;  %v1034_v15 = vld [vmem:[#allocation2 + $0x69] sm:$0xff] }
  0xa4   : > { %1764 = vmatprep.subr.bf16.mxu0 %v1763_v52  ;;  %1786 = vmatprep.subr.bf16.mxu1 %v1763_v52  ;;  %v1131_v16 = vld [vmem:[#allocation2 + $0x6a] sm:$0xff]  ;;  %v1133_v34 = vld [vmem:[#allocation2 + $0x82] sm:$0xff]  ;;  %v1134_v49 = vld [vmem:[#allocation2 + $0x92] sm:$0xff] }
  0xa5   : > { %v1037_v43 = vld [vmem:[#allocation2 + $0x91] sm:$0xff]  ;;  %v1039_v1 = vld [vmem:[#allocation2 + $0xa9] sm:$0xff] }
  0xa6   : > { %964 = vrot.lane.b32.xlu1 %v2227_v27, %s1983_s8  ;;  %1766 = vmatpush3.bf16.msra.mxu0 %v1763_v52 }
  0xa7   : > { %868 = vrot.lane.b32.xlu0 %v835_v51, %s1982_s29  ;;  %1794 = vmatpush3.bf16.msra.mxu1 %v1763_v52 }
  0xa8   : > { %1768 = vmatprep.subr.bf16.mxu0 %v1767_v56  ;;  %1787 = vmatprep.subr.bf16.mxu1 %v1767_v56 }
  0xaa   : > { %676 = vrot.lane.b32.xlu1 %v2227_v27, %s1980_s27  ;;  %1770 = vmatpush3.bf16.msra.mxu0 %v1767_v56 }
  0xab   : > { %580 = vrot.lane.b32.xlu0 %v835_v51, %s1978_s6  ;;  %1795 = vmatpush3.bf16.msra.mxu1 %v1767_v56  ;;  %v1135_v56 = vld [vmem:[#allocation2 + $0x9a] sm:$0xff] }
  0xac   : > { %1772 = vmatprep.subr.bf16.mxu0 %v1771_v60  ;;  %1788 = vmatprep.subr.bf16.mxu1 %v1771_v60 }
  0xae   : > { %1061 = vrot.lane.b32.xlu1 %v1029_v59, %s1984_s4  ;;  %1774 = vmatpush3.bf16.msra.mxu0 %v1771_v60 }
  0xaf   : > { %966 = vrot.lane.b32.xlu0 %v2229_v28, %s1983_s8  ;;  %1796 = vmatpush3.bf16.msra.mxu1 %v1771_v60 }
  0xb0   : > { %1776 = vmatprep.subr.bf16.mxu0 %v1775_v0  ;;  %1789 = vmatprep.subr.bf16.mxu1 %v1775_v0 }
  0xb2   : > { %773 = vrot.lane.b32.xlu1 %v1029_v59, %s1981_s9  ;;  %1778 = vmatpush3.bf16.msra.mxu0 %v1775_v0 }
  0xb3   : > { %678 = vrot.lane.b32.xlu0 %v2229_v28, %s1980_s27  ;;  %1797 = vmatpush3.bf16.msra.mxu1 %v1775_v0  ;;  %v1132_v28 = vld [vmem:[#allocation2 + $0x7a] sm:$0xff] }
  0xb4   : > { %1780 = vmatprep.subr.bf16.mxu0 %v1779_v5  ;;  %1790 = vmatprep.subr.bf16.mxu1 %v1779_v5 }
  0xb6   : > { %1158 = vrot.lane.b32.xlu1 %v1126_v3, %s1985_s10  ;;  %1782 = vmatpush3.bf16.msra.mxu0 %v1779_v5 }
  0xb7   : > { %1063 = vrot.lane.b32.xlu0 %v1030_v4, %s1984_s4  ;;  %1798 = vmatpush3.bf16.msra.mxu1 %v1779_v5 }
  0xba   : > { %775 = vrot.lane.b32.xlu1 %v1030_v4, %s1981_s9 }
  0xbb   : > { %485 = vrot.lane.b32.xlu0 %v1029_v59, %s1979_s20 }
  0xbe   : > { %1160 = vrot.lane.b32.xlu1 %v1127_v6, %s1985_s10 }
  0xbf   : > { %870 = vrot.lane.b32.xlu0 %v1126_v3, %s1982_s29 }
  0xc2   : > { %582 = vrot.lane.b32.xlu1 %v1126_v3, %s1978_s6 }
  0xc3   : > { %487 = vrot.lane.b32.xlu0 %v1030_v4, %s1979_s20 }
  0xc6   : > { %968 = vrot.lane.b32.xlu1 %v2235_v29, %s1983_s8 }
  0xc7   : > { %872 = vrot.lane.b32.xlu0 %v1127_v6, %s1982_s29 }
  0xca   : > { %680 = vrot.lane.b32.xlu1 %v2235_v29, %s1980_s27  ;;  %v1036_v29 = vld [vmem:[#allocation2 + $0x81] sm:$0xff] }
  0xcb   : > { %584 = vrot.lane.b32.xlu0 %v1127_v6, %s1978_s6 }
  0xce   : > { %1065 = vrot.lane.b32.xlu1 %v1031_v8, %s1984_s4 }
  0xcf   : > { %970 = vrot.lane.b32.xlu0 %v2239_v30, %s1983_s8 }
  0xd2   : > { %777 = vrot.lane.b32.xlu1 %v1031_v8, %s1981_s9 }
  0xd3   : > { %682 = vrot.lane.b32.xlu0 %v2239_v30, %s1980_s27 }
  0xd6   : > { %1162 = vrot.lane.b32.xlu1 %v1128_v10, %s1985_s10 }
  0xd7   : > { %1067 = vrot.lane.b32.xlu0 %v1032_v11, %s1984_s4 }
  0xda   : > { %779 = vrot.lane.b32.xlu1 %v1032_v11, %s1981_s9 }
  0xdb   : > { %489 = vrot.lane.b32.xlu0 %v1031_v8, %s1979_s20  ;;  %v1040_v8 = vld [vmem:[#allocation2 + $0xb1] sm:$0xff] }
  0xde   : > { %1164 = vrot.lane.b32.xlu1 %v1129_v12, %s1985_s10 }
  0xdf   : > { %874 = vrot.lane.b32.xlu0 %v1128_v10, %s1982_s29 }
  0xe2   : > { %586 = vrot.lane.b32.xlu1 %v1128_v10, %s1978_s6 }
  0xe3   : > { %491 = vrot.lane.b32.xlu0 %v1032_v11, %s1979_s20 }
  0xe6   : > { %972 = vrot.lane.b32.xlu1 %v2243_v31, %s1983_s8 }
  0xe7   : > { %876 = vrot.lane.b32.xlu0 %v1129_v12, %s1982_s29 }
  0xea   : > { %684 = vrot.lane.b32.xlu1 %v2243_v31, %s1980_s27 }
  0xeb   : > { %588 = vrot.lane.b32.xlu0 %v1129_v12, %s1978_s6 }
  0xee   : > { %1069 = vrot.lane.b32.xlu1 %v1033_v13, %s1984_s4 }
  0xef   : > { %974 = vrot.lane.b32.xlu0 %v2247_v32, %s1983_s8 }
  0xf2   : > { %781 = vrot.lane.b32.xlu1 %v1033_v13, %s1981_s9 }
  0xf3   : > { %686 = vrot.lane.b32.xlu0 %v2247_v32, %s1980_s27 }
  0xf6   : > { %1166 = vrot.lane.b32.xlu1 %v1130_v14, %s1985_s10 }
  0xf7   : > { %1071 = vrot.lane.b32.xlu0 %v1034_v15, %s1984_s4 }
  0xfa   : > { %783 = vrot.lane.b32.xlu1 %v1034_v15, %s1981_s9 }
  0xfb   : > { %493 = vrot.lane.b32.xlu0 %v1033_v13, %s1979_s20 }
  0xfe   : > { %1168 = vrot.lane.b32.xlu1 %v1131_v16, %s1985_s10 }
  0xff   : > { %878 = vrot.lane.b32.xlu0 %v1130_v14, %s1982_s29 }
 0x100   : > { %v575_v17 = vpop.permute.xlu1 %574 }
 0x101   : > { %v478_v18 = vpop.permute.xlu0 %477 }
 0x102   : > { %526 = vst.msk [vmem:[#allocation3] sm:$0xff] %vm525_vm2, %v478_v18  ;;  %590 = vrot.lane.b32.xlu1 %v1130_v14, %s1978_s6 }
 0x103   : > { %495 = vrot.lane.b32.xlu0 %v1034_v15, %s1979_s20  ;;  %623 = vst.msk [vmem:[#allocation3] sm:$0xff] %vm622_vm3, %v575_v17 }
 0x104   : > { %v577_v19 = vpop.permute.xlu1 %576 }
 0x105   : > { %v480_v20 = vpop.permute.xlu0 %479 }
 0x106   : > { %527 = vst.msk [vmem:[#allocation3 + $0x8] sm:$0xff] %vm525_vm2, %v480_v20  ;;  %976 = vrot.lane.b32.xlu1 %v2257_v36, %s1983_s8 }
 0x107   : > { %880 = vrot.lane.b32.xlu0 %v1131_v16, %s1982_s29  ;;  %624 = vst.msk [vmem:[#allocation3 + $0x8] sm:$0xff] %vm622_vm3, %v577_v19  ;;  %v944_v19 = vld [vmem:[#allocation2 + $0xc0] sm:$0xff] }
 0x108   : > { %v675_v21 = vpop.permute.xlu1 %674 }
 0x109   : > { %v673_v22 = vpop.permute.xlu0 %672  ;;  %722 = vst.msk [vmem:[#allocation3 + $0x8] sm:$0xff] %vm720_vm4, %v675_v21 }
 0x10a   : > { %721 = vst.msk [vmem:[#allocation3] sm:$0xff] %vm720_vm4, %v673_v22  ;;  %688 = vrot.lane.b32.xlu1 %v2257_v36, %s1980_s27 }
 0x10b   : > { %592 = vrot.lane.b32.xlu0 %v1131_v16, %s1978_s6 }
 0x10c   : > { %v482_v24 = vpop.permute.xlu1 %481 }
 0x10d   : > { %v770_v25 = vpop.permute.xlu0 %769  ;;  %528 = vst.msk [vmem:[#allocation3 + $0x10] sm:$0xff] %vm525_vm2, %v482_v24  ;;  %v945_v24 = vld [vmem:[#allocation2 + $0xc8] sm:$0xff] }
 0x10e   : > { %818 = vst.msk [vmem:[#allocation3] sm:$0xff] %vm817_vm5, %v770_v25  ;;  %1073 = vrot.lane.b32.xlu1 %v1035_v23, %s1984_s4  ;;  %v1041_v25 = vld [vmem:[#allocation2 + $0xc1] sm:$0xff] }
 0x10f   : > { %978 = vrot.lane.b32.xlu0 %v2259_v37, %s1983_s8 }
 0x110   : > { %v867_v26 = vpop.permute.xlu1 %866 }
 0x111   : > { %v772_v27 = vpop.permute.xlu0 %771  ;;  %915 = vst.msk [vmem:[#allocation3] sm:$0xff] %vm914_vm6, %v867_v26 }
 0x112   : > { %819 = vst.msk [vmem:[#allocation3 + $0x8] sm:$0xff] %vm817_vm5, %v772_v27  ;;  %785 = vrot.lane.b32.xlu1 %v1035_v23, %s1981_s9 }
 0x113   : > { %690 = vrot.lane.b32.xlu0 %v2259_v37, %s1980_s27 }
 0x114   : > { %v579_v30 = vpop.permute.xlu1 %578 }
 0x115   : > { %v484_v31 = vpop.permute.xlu0 %483  ;;  %625 = vst.msk [vmem:[#allocation3 + $0x10] sm:$0xff] %vm622_vm3, %v579_v30 }
 0x116   : > { %529 = vst.msk [vmem:[#allocation3 + $0x18] sm:$0xff] %vm525_vm2, %v484_v31  ;;  %1170 = vrot.lane.b32.xlu1 %v1132_v28, %s1985_s10  ;;  %v1042_v31 = vld [vmem:[#allocation2 + $0xc9] sm:$0xff] }
 0x117   : > { %1075 = vrot.lane.b32.xlu0 %v1036_v29, %s1984_s4 }
 0x118   : > { %v965_v32 = vpop.permute.xlu1 %964 }
 0x119   : > { %v869_v33 = vpop.permute.xlu0 %868  ;;  %1013 = vst.msk [vmem:[#allocation3] sm:$0xff] %vm1012_vm7, %v965_v32  ;;  %v1138_v32 = vld [vmem:[#allocation2 + $0xc2] sm:$0xff] }
 0x11a   : > { %916 = vst.msk [vmem:[#allocation3 + $0x8] sm:$0xff] %vm914_vm6, %v869_v33  ;;  %787 = vrot.lane.b32.xlu1 %v1036_v29, %s1981_s9 }
 0x11b   : > { %497 = vrot.lane.b32.xlu0 %v1035_v23, %s1979_s20 }
 0x11c   : > { %v677_v35 = vpop.permute.xlu1 %676 }
 0x11d   : > { %v581_v36 = vpop.permute.xlu0 %580  ;;  %723 = vst.msk [vmem:[#allocation3 + $0x10] sm:$0xff] %vm720_vm4, %v677_v35 }
 0x11e   : > { %626 = vst.msk [vmem:[#allocation3 + $0x18] sm:$0xff] %vm622_vm3, %v581_v36  ;;  %1172 = vrot.lane.b32.xlu1 %v1133_v34, %s1985_s10 }
 0x11f   : > { %882 = vrot.lane.b32.xlu0 %v1132_v28, %s1982_s29 }
 0x120   : > { %v1062_v37 = vpop.permute.xlu1 %1061 }
 0x121   : > { %v967_v38 = vpop.permute.xlu0 %966  ;;  %1110 = vst.msk [vmem:[#allocation3] sm:$0xff] %vm1109_vm8, %v1062_v37 }
 0x122   : > { %1014 = vst.msk [vmem:[#allocation3 + $0x8] sm:$0xff] %vm1012_vm7, %v967_v38  ;;  %594 = vrot.lane.b32.xlu1 %v1132_v28, %s1978_s6  ;;  %v1139_v38 = vld [vmem:[#allocation2 + $0xca] sm:$0xff] }
 0x123   : > { %499 = vrot.lane.b32.xlu0 %v1036_v29, %s1979_s20 }
 0x124   : > { %v774_v39 = vpop.permute.xlu1 %773 }
 0x125   : > { %v679_v40 = vpop.permute.xlu0 %678  ;;  %820 = vst.msk [vmem:[#allocation3 + $0x10] sm:$0xff] %vm817_vm5, %v774_v39 }
 0x126   : > { %724 = vst.msk [vmem:[#allocation3 + $0x18] sm:$0xff] %vm720_vm4, %v679_v40  ;;  %980 = vrot.lane.b32.xlu1 %v2295_v53, %s1983_s8 }
 0x127   : > { %884 = vrot.lane.b32.xlu0 %v1133_v34, %s1982_s29 }
 0x128   : > { %v1159_v41 = vpop.permute.xlu1 %1158 }
 0x129   : > { %v1064_v42 = vpop.permute.xlu0 %1063  ;;  %1207 = vst.msk [vmem:[#allocation3] sm:$0xff] %vm1206_vm9, %v1159_v41  ;;  %v946_v41 = vld [vmem:[#allocation2 + $0xd8] sm:$0xff] }
 0x12a   : > { %1111 = vst.msk [vmem:[#allocation3 + $0x8] sm:$0xff] %vm1109_vm8, %v1064_v42  ;;  %692 = vrot.lane.b32.xlu1 %v2295_v53, %s1980_s27  ;;  %v947_v42 = vld [vmem:[#allocation2 + $0xe0] sm:$0xff] }
 0x12b   : > { %596 = vrot.lane.b32.xlu0 %v1133_v34, %s1978_s6 }
 0x12c   : > { %v776_v44 = vpop.permute.xlu1 %775 }
 0x12d   : > { %v486_v45 = vpop.permute.xlu0 %485  ;;  %821 = vst.msk [vmem:[#allocation3 + $0x18] sm:$0xff] %vm817_vm5, %v776_v44 }
 0x12e   : > { %530 = vst.msk [vmem:[#allocation3 + $0x20] sm:$0xff] %vm525_vm2, %v486_v45  ;;  %1077 = vrot.lane.b32.xlu1 %v1037_v43, %s1984_s4  ;;  %v1043_v45 = vld [vmem:[#allocation2 + $0xd9] sm:$0xff] }
 0x12f   : > { %982 = vrot.lane.b32.xlu0 %v2317_v61, %s1983_s8 }
 0x130   : > { %v1161_v46 = vpop.permute.xlu1 %1160  ;;  %v1223_v48 = vld [vmem:[#allocation3] sm:$0xff] }
 0x131   : > { %v871_v47 = vpop.permute.xlu0 %870  ;;  %1208 = vst.msk [vmem:[#allocation3 + $0x8] sm:$0xff] %vm1206_vm9, %v1161_v46  ;;  %1727 = vmatprep.mubr.f32.mxu0 %v1223_v48  ;;  %v1044_v46 = vld [vmem:[#allocation2 + $0xe1] sm:$0xff] }
 0x132   : > { %917 = vst.msk [vmem:[#allocation3 + $0x10] sm:$0xff] %vm914_vm6, %v871_v47  ;;  %789 = vrot.lane.b32.xlu1 %v1037_v43, %s1981_s9 }
 0x133   : > { %694 = vrot.lane.b32.xlu0 %v2317_v61, %s1980_s27 }
 0x134   : > { %v583_v51 = vpop.permute.xlu1 %582 }
 0x135   : > { %v488_v52 = vpop.permute.xlu0 %487  ;;  %627 = vst.msk [vmem:[#allocation3 + $0x20] sm:$0xff] %vm622_vm3, %v583_v51 }
 0x136   : > { %531 = vst.msk [vmem:[#allocation3 + $0x28] sm:$0xff] %vm525_vm2, %v488_v52  ;;  %1174 = vrot.lane.b32.xlu1 %v1134_v49, %s1985_s10 }
 0x137   : > { %1079 = vrot.lane.b32.xlu0 %v1038_v50, %s1984_s4 }
 0x138   : > { %v969_v53 = vpop.permute.xlu1 %968  ;;  %v1224_v55 = vld [vmem:[#allocation3 + $0x8] sm:$0xff] }
 0x139   : > { %v873_v54 = vpop.permute.xlu0 %872  ;;  %1015 = vst.msk [vmem:[#allocation3 + $0x10] sm:$0xff] %vm1012_vm7, %v969_v53  ;;  %1728 = vmatmul.mubr.f32.vlgmr.msra.gmra.mrb[0].mxu0 %v1224_v55 }
 0x13a   : > { %918 = vst.msk [vmem:[#allocation3 + $0x18] sm:$0xff] %vm914_vm6, %v873_v54  ;;  %791 = vrot.lane.b32.xlu1 %v1038_v50, %s1981_s9 }
 0x13b   : > { %501 = vrot.lane.b32.xlu0 %v1037_v43, %s1979_s20 }
 0x13c   : > { %v681_v57 = vpop.permute.xlu1 %680 }
 0x13d   : > { %v585_v58 = vpop.permute.xlu0 %584  ;;  %725 = vst.msk [vmem:[#allocation3 + $0x20] sm:$0xff] %vm720_vm4, %v681_v57 }
 0x13e   : > { %628 = vst.msk [vmem:[#allocation3 + $0x28] sm:$0xff] %vm622_vm3, %v585_v58  ;;  %1176 = vrot.lane.b32.xlu1 %v1135_v56, %s1985_s10 }
 0x13f   : > { %886 = vrot.lane.b32.xlu0 %v1134_v49, %s1982_s29 }
 0x140   : > { %v1066_v59 = vpop.permute.xlu1 %1065 }
 0x141   : > { %v971_v60 = vpop.permute.xlu0 %970  ;;  %1112 = vst.msk [vmem:[#allocation3 + $0x10] sm:$0xff] %vm1109_vm8, %v1066_v59 }
 0x142   : > { %1016 = vst.msk [vmem:[#allocation3 + $0x18] sm:$0xff] %vm1012_vm7, %v971_v60  ;;  %598 = vrot.lane.b32.xlu1 %v1134_v49, %s1978_s6  ;;  %v1140_v49 = vld [vmem:[#allocation2 + $0xda] sm:$0xff] }
 0x143   : > { %503 = vrot.lane.b32.xlu0 %v1038_v50, %s1979_s20  ;;  %v1141_v50 = vld [vmem:[#allocation2 + $0xe2] sm:$0xff] }
 0x144   : > { %v778_v61 = vpop.permute.xlu1 %777 }
 0x145   : > { %v683_v62 = vpop.permute.xlu0 %682  ;;  %822 = vst.msk [vmem:[#allocation3 + $0x20] sm:$0xff] %vm817_vm5, %v778_v61 }
 0x146   : > { %726 = vst.msk [vmem:[#allocation3 + $0x28] sm:$0xff] %vm720_vm4, %v683_v62  ;;  %984 = vrot.lane.b32.xlu1 %v2347_v7, %s1983_s8 }
 0x147   : > { %888 = vrot.lane.b32.xlu0 %v1135_v56, %s1982_s29 }
 0x148   : > { %v1163_v63 = vpop.permute.xlu1 %1162 }
 0x149   : > { %v1068_v0 = vpop.permute.xlu0 %1067  ;;  %1209 = vst.msk [vmem:[#allocation3 + $0x10] sm:$0xff] %vm1206_vm9, %v1163_v63 }
 0x14a   : > { %1113 = vst.msk [vmem:[#allocation3 + $0x18] sm:$0xff] %vm1109_vm8, %v1068_v0  ;;  %696 = vrot.lane.b32.xlu1 %v2347_v7, %s1980_s27  ;;  %v1136_v7 = vld [vmem:[#allocation2 + $0xaa] sm:$0xff] }
 0x14b   : > { %600 = vrot.lane.b32.xlu0 %v1135_v56, %s1978_s6 }
 0x14c   : > { %v780_v2 = vpop.permute.xlu1 %779 }
 0x14d   : > { %v490_v3 = vpop.permute.xlu0 %489  ;;  %823 = vst.msk [vmem:[#allocation3 + $0x28] sm:$0xff] %vm817_vm5, %v780_v2 }
 0x14e   : > { %532 = vst.msk [vmem:[#allocation3 + $0x30] sm:$0xff] %vm525_vm2, %v490_v3  ;;  %1081 = vrot.lane.b32.xlu1 %v1039_v1, %s1984_s4 }
 0x14f   : > { %986 = vrot.lane.b32.xlu0 %v2357_v9, %s1983_s8 }
 0x150   : > { %v1165_v4 = vpop.permute.xlu1 %1164  ;;  %v1225_v6 = vld [vmem:[#allocation3 + $0x10] sm:$0xff] }
 0x151   : > { %v875_v5 = vpop.permute.xlu0 %874  ;;  %1210 = vst.msk [vmem:[#allocation3 + $0x18] sm:$0xff] %vm1206_vm9, %v1165_v4  ;;  %1730 = vmatprep.mubr.f32.mxu0 %v1225_v6 }
 0x152   : > { %919 = vst.msk [vmem:[#allocation3 + $0x20] sm:$0xff] %vm914_vm6, %v875_v5  ;;  %793 = vrot.lane.b32.xlu1 %v1039_v1, %s1981_s9 }
 0x153   : > { %698 = vrot.lane.b32.xlu0 %v2357_v9, %s1980_s27  ;;  %v1137_v9 = vld [vmem:[#allocation2 + $0xb2] sm:$0xff] }
 0x154   : > { %v587_v10 = vpop.permute.xlu1 %586 }
 0x155   : > { %v492_v11 = vpop.permute.xlu0 %491  ;;  %629 = vst.msk [vmem:[#allocation3 + $0x30] sm:$0xff] %vm622_vm3, %v587_v10 }
 0x156   : > { %533 = vst.msk [vmem:[#allocation3 + $0x38] sm:$0xff] %vm525_vm2, %v492_v11  ;;  %1178 = vrot.lane.b32.xlu1 %v1136_v7, %s1985_s10 }
 0x157   : > { %1083 = vrot.lane.b32.xlu0 %v1040_v8, %s1984_s4 }
 0x158   : > { %v973_v12 = vpop.permute.xlu1 %972  ;;  %v1226_v14 = vld [vmem:[#allocation3 + $0x18] sm:$0xff] }
 0x159   : > { %v877_v13 = vpop.permute.xlu0 %876  ;;  %1017 = vst.msk [vmem:[#allocation3 + $0x20] sm:$0xff] %vm1012_vm7, %v973_v12  ;;  %1731 = vmatmul.mubr.f32.gmra.mrb[2].mxu0 %v1226_v14 }
 0x15a   : > { %920 = vst.msk [vmem:[#allocation3 + $0x28] sm:$0xff] %vm914_vm6, %v877_v13  ;;  %795 = vrot.lane.b32.xlu1 %v1040_v8, %s1981_s9 }
 0x15b   : > { %505 = vrot.lane.b32.xlu0 %v1039_v1, %s1979_s20 }
 0x15c   : > { %v685_v15 = vpop.permute.xlu1 %684 }
 0x15d   : > { %v589_v16 = vpop.permute.xlu0 %588  ;;  %727 = vst.msk [vmem:[#allocation3 + $0x30] sm:$0xff] %vm720_vm4, %v685_v15 }
 0x15e   : > { %630 = vst.msk [vmem:[#allocation3 + $0x38] sm:$0xff] %vm622_vm3, %v589_v16  ;;  %1180 = vrot.lane.b32.xlu1 %v1137_v9, %s1985_s10 }
 0x15f   : > { %890 = vrot.lane.b32.xlu0 %v1136_v7, %s1982_s29 }
 0x160   : > { %v1070_v17 = vpop.permute.xlu1 %1069 }
 0x161   : > { %v975_v18 = vpop.permute.xlu0 %974  ;;  %1114 = vst.msk [vmem:[#allocation3 + $0x20] sm:$0xff] %vm1109_vm8, %v1070_v17 }
 0x162   : > { %1018 = vst.msk [vmem:[#allocation3 + $0x28] sm:$0xff] %vm1012_vm7, %v975_v18  ;;  %602 = vrot.lane.b32.xlu1 %v1136_v7, %s1978_s6 }
 0x163   : > { %507 = vrot.lane.b32.xlu0 %v1040_v8, %s1979_s20 }
 0x164   : > { %v782_v20 = vpop.permute.xlu1 %781 }
 0x165   : > { %v687_v21 = vpop.permute.xlu0 %686  ;;  %824 = vst.msk [vmem:[#allocation3 + $0x30] sm:$0xff] %vm817_vm5, %v782_v20 }
 0x166   : > { %728 = vst.msk [vmem:[#allocation3 + $0x38] sm:$0xff] %vm720_vm4, %v687_v21  ;;  %988 = vrot.lane.b32.xlu1 %v944_v19, %s1983_s8 }
 0x167   : > { %892 = vrot.lane.b32.xlu0 %v1137_v9, %s1982_s29 }
 0x168   : > { %v1167_v22 = vpop.permute.xlu1 %1166 }
 0x169   : > { %v1072_v23 = vpop.permute.xlu0 %1071  ;;  %1211 = vst.msk [vmem:[#allocation3 + $0x20] sm:$0xff] %vm1206_vm9, %v1167_v22 }
 0x16a   : > { %1115 = vst.msk [vmem:[#allocation3 + $0x28] sm:$0xff] %vm1109_vm8, %v1072_v23  ;;  %700 = vrot.lane.b32.xlu1 %v944_v19, %s1980_s27 }
 0x16b   : > { %604 = vrot.lane.b32.xlu0 %v1137_v9, %s1978_s6 }
 0x16c   : > { %v784_v26 = vpop.permute.xlu1 %783 }
 0x16d   : > { %v494_v27 = vpop.permute.xlu0 %493  ;;  %825 = vst.msk [vmem:[#allocation3 + $0x38] sm:$0xff] %vm817_vm5, %v784_v26 }
 0x16e   : > { %534 = vst.msk [vmem:[#allocation3 + $0x40] sm:$0xff] %vm525_vm2, %v494_v27  ;;  %1085 = vrot.lane.b32.xlu1 %v1041_v25, %s1984_s4 }
 0x16f   : > { %990 = vrot.lane.b32.xlu0 %v945_v24, %s1983_s8 }
 0x170   : > { %v1169_v28 = vpop.permute.xlu1 %1168  ;;  %v1227_v30 = vld [vmem:[#allocation3 + $0x20] sm:$0xff] }
 0x171   : > { %v879_v29 = vpop.permute.xlu0 %878  ;;  %1212 = vst.msk [vmem:[#allocation3 + $0x28] sm:$0xff] %vm1206_vm9, %v1169_v28  ;;  %1733 = vmatprep.mubr.f32.mxu0 %v1227_v30 }
 0x172   : > { %921 = vst.msk [vmem:[#allocation3 + $0x30] sm:$0xff] %vm914_vm6, %v879_v29  ;;  %797 = vrot.lane.b32.xlu1 %v1041_v25, %s1981_s9 }
 0x173   : > { %702 = vrot.lane.b32.xlu0 %v945_v24, %s1980_s27  ;;  %s1649_s27 = sshll.u32 %s1963_s16, 1 }
 0x174   : > { %v591_v33 = vpop.permute.xlu1 %590 }
 0x175   : > { %v496_v34 = vpop.permute.xlu0 %495  ;;  %631 = vst.msk [vmem:[#allocation3 + $0x40] sm:$0xff] %vm622_vm3, %v591_v33 }
 0x176   : > { %535 = vst.msk [vmem:[#allocation3 + $0x48] sm:$0xff] %vm525_vm2, %v496_v34  ;;  %1182 = vrot.lane.b32.xlu1 %v1138_v32, %s1985_s10 }
 0x177   : > { %1087 = vrot.lane.b32.xlu0 %v1042_v31, %s1984_s4 }
 0x178   : > { %v977_v35 = vpop.permute.xlu1 %976  ;;  %v1228_v37 = vld [vmem:[#allocation3 + $0x28] sm:$0xff] }
 0x179   : > { %v881_v36 = vpop.permute.xlu0 %880  ;;  %1019 = vst.msk [vmem:[#allocation3 + $0x30] sm:$0xff] %vm1012_vm7, %v977_v35  ;;  %1734 = vmatmul.mubr.f32.gmra.mrb[4].mxu0 %v1228_v37 }
 0x17a   : > { %922 = vst.msk [vmem:[#allocation3 + $0x38] sm:$0xff] %vm914_vm6, %v881_v36  ;;  %894 = vrot.lane.b32.xlu1 %v1138_v32, %s1982_s29 }
 0x17b   : > { %799 = vrot.lane.b32.xlu0 %v1042_v31, %s1981_s9  ;;  %s1455_s9 = sadd.s32 %s1959_s15, %s1649_s27  ;;  %s2677_s15 = sand.u32 1, %s1951_s13  }
 0x17c   : > { %v689_v39 = vpop.permute.xlu1 %688  ;;  %s1442_s16 = scalar_lea.sflag [#allocation5], %s2677_s15 }
 0x17d   : > { %v593_v40 = vpop.permute.xlu0 %592  ;;  %729 = vst.msk [vmem:[#allocation3 + $0x40] sm:$0xff] %vm720_vm4, %v689_v39 }
 0x17e   : > { %632 = vst.msk [vmem:[#allocation3 + $0x48] sm:$0xff] %vm622_vm3, %v593_v40  ;;  %896 = vrot.lane.b32.xlu1 %v1139_v38, %s1982_s29  ;;  %s1650_s29 = sshll.u32 %s1455_s9, 7 }
 0x17f   : > { %1184 = vrot.lane.b32.xlu0 %v1139_v38, %s1985_s10  ;;  %s2613_s24 = scalar_lea.hbm %s2673_s3, %s1650_s29 }
 0x180   : > { %v1074_v43 = vpop.permute.xlu1 %1073 }
 0x181   : > { %v979_v44 = vpop.permute.xlu0 %978  ;;  %1116 = vst.msk [vmem:[#allocation3 + $0x30] sm:$0xff] %vm1109_vm8, %v1074_v43 }
 0x182   : > { %1020 = vst.msk [vmem:[#allocation3 + $0x38] sm:$0xff] %vm1012_vm7, %v979_v44  ;;  %994 = vrot.lane.b32.xlu1 %v947_v42, %s1983_s8 }
 0x183   : > { %992 = vrot.lane.b32.xlu0 %v946_v41, %s1983_s8  ;;  %s1459_s8 = sshll.u32 %s212_s21, 4  ;;  %s2615_s8 = int_to_ptr.vmem [resolvable:$true] %s1459_s8 }
 0x184   : > { %v786_v47 = vpop.permute.xlu1 %785  ;;  %s1881_s28 = scalar_lea.vmem %s2615_s8, 128 }
 0x185   : > { %v691_v48 = vpop.permute.xlu0 %690  ;;  %826 = vst.msk [vmem:[#allocation3 + $0x40] sm:$0xff] %vm817_vm5, %v786_v47  ;;  %p1882_p6 = scmp.ne.s32.totalorder %s2615_s8, %s1881_s28 }
 0x186   : > { %730 = vst.msk [vmem:[#allocation3 + $0x48] sm:$0xff] %vm720_vm4, %v691_v48  ;;  %1091 = vrot.lane.b32.xlu1 %v1044_v46, %s1984_s4 }
 0x187   : > { %1089 = vrot.lane.b32.xlu0 %v1043_v45, %s1984_s4  ;;  %p1883_p7 = pnand %p1882_p6, %p2059_p3 }
 0x188   : > { %v1171_v51 = vpop.permute.xlu1 %1170 }
 0x189   : > { %v1076_v52 = vpop.permute.xlu0 %1075  ;;  %1213 = vst.msk [vmem:[#allocation3 + $0x30] sm:$0xff] %vm1206_vm9, %v1171_v51  ;;  %p1884_p9 = pneg %p1883_p7 }
 0x18a   : > { %1117 = vst.msk [vmem:[#allocation3 + $0x38] sm:$0xff] %vm1109_vm8, %v1076_v52  ;;  %1188 = vrot.lane.b32.xlu1 %v1141_v50, %s1985_s10 }
 0x18b   : > { %1186 = vrot.lane.b32.xlu0 %v1140_v49, %s1985_s10  ;;  %s1885_s10 = sshll.u32 %s1987_s7, 4  ;;  %s1886_s10 = int_to_ptr.vmem [resolvable:$false] %s1885_s10 }
 0x18c   : > { %v788_v53 = vpop.permute.xlu1 %787  ;;  %s1887_s6 = scalar_lea.vmem %s1886_s10, 256  ;;  %p1888_p10 = scmp.lt.s32.totalorder %s2615_s8, %s1886_s10 }
 0x18d   : > { %v498_v54 = vpop.permute.xlu0 %497  ;;  %827 = vst.msk [vmem:[#allocation3 + $0x48] sm:$0xff] %vm817_vm5, %v788_v53  ;;  %p1889_p11 = scmp.lt.s32.totalorder %s1887_s6, %s1881_s28 }
 0x18e   : > { %536 = vst.msk [vmem:[#allocation3 + $0x50] sm:$0xff] %vm525_vm2, %v498_v54 }
 0x18f   : > { %p1890_p12 = por %p1889_p11, %p1888_p10 }
 0x190   : > { %v1173_v55 = vpop.permute.xlu1 %1172  ;;  %v1229_v57 = vld [vmem:[#allocation3 + $0x30] sm:$0xff] }
 0x191   : > { %v883_v56 = vpop.permute.xlu0 %882  ;;  %1214 = vst.msk [vmem:[#allocation3 + $0x38] sm:$0xff] %vm1206_vm9, %v1173_v55  ;;  %1736 = vmatprep.mubr.f32.mxu0 %v1229_v57  ;;  %p1891_p13 = pnand %p1890_p12, %p1884_p9 }
 0x192   : > { %923 = vst.msk [vmem:[#allocation3 + $0x40] sm:$0xff] %vm914_vm6, %v883_v56 }
 0x194   : > { %v595_v58 = vpop.permute.xlu1 %594 }
 0x195   : > { %v500_v59 = vpop.permute.xlu0 %499  ;;  %633 = vst.msk [vmem:[#allocation3 + $0x50] sm:$0xff] %vm622_vm3, %v595_v58 }
 0x196   : > { %537 = vst.msk [vmem:[#allocation3 + $0x58] sm:$0xff] %vm525_vm2, %v500_v59  ;;  %v1432_v59 = vld [vmem:[%s2672_s2] sm:$0xff] }
 0x198   : > { %v981_v60 = vpop.permute.xlu1 %980  ;;  %v1230_v62 = vld [vmem:[#allocation3 + $0x38] sm:$0xff] }
 0x199   : > { %v885_v61 = vpop.permute.xlu0 %884  ;;  %1021 = vst.msk [vmem:[#allocation3 + $0x40] sm:$0xff] %vm1012_vm7, %v981_v60  ;;  %1737 = vmatmul.mubr.f32.gmra.mrb[6].mxu0 %v1230_v62  ;;  %v1986_v60 = vmov 0  }
 0x19a   : > { %924 = vst.msk [vmem:[#allocation3 + $0x48] sm:$0xff] %vm914_vm6, %v885_v61  ;;  %1880 = vset.pattern.permute.xlu0 %v1986_v60 }
 0x19b   : > { %1435 = vperm.xlu0 %1880, %v1432_v59  }
 0x19c   : > { %v693_v63 = vpop.permute.xlu1 %692 }
 0x19d   : > { %v597_v0 = vpop.permute.xlu0 %596  ;;  %731 = vst.msk [vmem:[#allocation3 + $0x50] sm:$0xff] %vm720_vm4, %v693_v63 }
 0x19e   : > { %634 = vst.msk [vmem:[#allocation3 + $0x58] sm:$0xff] %vm622_vm3, %v597_v0 }
 0x1a0   : > { %v1078_v1 = vpop.permute.xlu1 %1077 }
 0x1a1   : > { %v983_v2 = vpop.permute.xlu0 %982  ;;  %1118 = vst.msk [vmem:[#allocation3 + $0x40] sm:$0xff] %vm1109_vm8, %v1078_v1 }
 0x1a2   : > { %1022 = vst.msk [vmem:[#allocation3 + $0x48] sm:$0xff] %vm1012_vm7, %v983_v2 }
 0x1a4   : > { %v790_v3 = vpop.permute.xlu1 %789 }
 0x1a5   : > { %v695_v4 = vpop.permute.xlu0 %694  ;;  %828 = vst.msk [vmem:[#allocation3 + $0x50] sm:$0xff] %vm817_vm5, %v790_v3 }
 0x1a6   : > { %732 = vst.msk [vmem:[#allocation3 + $0x58] sm:$0xff] %vm720_vm4, %v695_v4 }
 0x1a8   : > { %v1175_v5 = vpop.permute.xlu1 %1174 }
 0x1a9   : > { %v1080_v6 = vpop.permute.xlu0 %1079  ;;  %1215 = vst.msk [vmem:[#allocation3 + $0x40] sm:$0xff] %vm1206_vm9, %v1175_v5 }
 0x1aa   : > { %1119 = vst.msk [vmem:[#allocation3 + $0x48] sm:$0xff] %vm1109_vm8, %v1080_v6 }
 0x1ac   : > { %v792_v7 = vpop.permute.xlu1 %791 }
 0x1ad   : > { %v502_v8 = vpop.permute.xlu0 %501  ;;  %829 = vst.msk [vmem:[#allocation3 + $0x58] sm:$0xff] %vm817_vm5, %v792_v7 }
 0x1ae   : > { %538 = vst.msk [vmem:[#allocation3 + $0x60] sm:$0xff] %vm525_vm2, %v502_v8 }
 0x1b0   : > { %v1177_v10 = vpop.permute.xlu1 %1176  ;;  %v1231_v12 = vld [vmem:[#allocation3 + $0x40] sm:$0xff] }
 0x1b1   : > { %v887_v11 = vpop.permute.xlu0 %886  ;;  %1216 = vst.msk [vmem:[#allocation3 + $0x48] sm:$0xff] %vm1206_vm9, %v1177_v10  ;;  %1739 = vmatprep.mubr.f32.mxu1 %v1231_v12 }
 0x1b2   : > { %925 = vst.msk [vmem:[#allocation3 + $0x50] sm:$0xff] %vm914_vm6, %v887_v11 }
 0x1b4   : > { %v599_v13 = vpop.permute.xlu1 %598 }
 0x1b5   : > { %v504_v14 = vpop.permute.xlu0 %503  ;;  %635 = vst.msk [vmem:[#allocation3 + $0x60] sm:$0xff] %vm622_vm3, %v599_v13 }
 0x1b6   : > { %539 = vst.msk [vmem:[#allocation3 + $0x68] sm:$0xff] %vm525_vm2, %v504_v14 }
 0x1b8   : > { %v985_v9 = vpop.permute.xlu1 %984  ;;  %v1232_v16 = vld [vmem:[#allocation3 + $0x48] sm:$0xff] }
 0x1b9   : > { %v889_v15 = vpop.permute.xlu0 %888  ;;  %1023 = vst.msk [vmem:[#allocation3 + $0x50] sm:$0xff] %vm1012_vm7, %v985_v9  ;;  %1740 = vmatmul.mubr.f32.vlgmr.msra.gmra.mrb[0].mxu1 %v1232_v16 }
 0x1ba   : > { %926 = vst.msk [vmem:[#allocation3 + $0x58] sm:$0xff] %vm914_vm6, %v889_v15 }
 0x1bc   : > { %v697_v17 = vpop.permute.xlu1 %696 }
 0x1bd   : > { %v601_v18 = vpop.permute.xlu0 %600  ;;  %733 = vst.msk [vmem:[#allocation3 + $0x60] sm:$0xff] %vm720_vm4, %v697_v17 }
 0x1be   : > { %636 = vst.msk [vmem:[#allocation3 + $0x68] sm:$0xff] %vm622_vm3, %v601_v18 }
 0x1c0   : > { %v1082_v19 = vpop.permute.xlu1 %1081 }
 0x1c1   : > { %v987_v20 = vpop.permute.xlu0 %986  ;;  %1120 = vst.msk [vmem:[#allocation3 + $0x50] sm:$0xff] %vm1109_vm8, %v1082_v19 }
 0x1c2   : > { %1024 = vst.msk [vmem:[#allocation3 + $0x58] sm:$0xff] %vm1012_vm7, %v987_v20 }
 0x1c4   : > { %v794_v21 = vpop.permute.xlu1 %793 }
 0x1c5   : > { %v699_v22 = vpop.permute.xlu0 %698  ;;  %830 = vst.msk [vmem:[#allocation3 + $0x60] sm:$0xff] %vm817_vm5, %v794_v21 }
 0x1c6   : > { %734 = vst.msk [vmem:[#allocation3 + $0x68] sm:$0xff] %vm720_vm4, %v699_v22 }
 0x1c8   : > { %v1179_v23 = vpop.permute.xlu1 %1178 }
 0x1c9   : > { %v1084_v24 = vpop.permute.xlu0 %1083  ;;  %1217 = vst.msk [vmem:[#allocation3 + $0x50] sm:$0xff] %vm1206_vm9, %v1179_v23 }
 0x1ca   : > { %1121 = vst.msk [vmem:[#allocation3 + $0x58] sm:$0xff] %vm1109_vm8, %v1084_v24 }
 0x1cc   : > { %v796_v25 = vpop.permute.xlu1 %795 }
 0x1cd   : > { %v506_v26 = vpop.permute.xlu0 %505  ;;  %831 = vst.msk [vmem:[#allocation3 + $0x68] sm:$0xff] %vm817_vm5, %v796_v25 }
 0x1ce   : > { %540 = vst.msk [vmem:[#allocation3 + $0x70] sm:$0xff] %vm525_vm2, %v506_v26 }
 0x1d0   : > { %v1181_v27 = vpop.permute.xlu1 %1180  ;;  %v1233_v29 = vld [vmem:[#allocation3 + $0x50] sm:$0xff] }
 0x1d1   : > { %v891_v28 = vpop.permute.xlu0 %890  ;;  %1218 = vst.msk [vmem:[#allocation3 + $0x58] sm:$0xff] %vm1206_vm9, %v1181_v27  ;;  %1742 = vmatprep.mubr.f32.mxu1 %v1233_v29 }
 0x1d2   : > { %927 = vst.msk [vmem:[#allocation3 + $0x60] sm:$0xff] %vm914_vm6, %v891_v28 }
 0x1d4   : > { %v603_v31 = vpop.permute.xlu1 %602 }
 0x1d5   : > { %v508_v30 = vpop.permute.xlu0 %507  ;;  %637 = vst.msk [vmem:[#allocation3 + $0x70] sm:$0xff] %vm622_vm3, %v603_v31 }
 0x1d6   : > { %541 = vst.msk [vmem:[#allocation3 + $0x78] sm:$0xff] %vm525_vm2, %v508_v30 }
 0x1d8   : > { %v989_v33 = vpop.permute.xlu1 %988  ;;  %v1234_v34 = vld [vmem:[#allocation3 + $0x58] sm:$0xff] }
 0x1d9   : > { %v893_v32 = vpop.permute.xlu0 %892  ;;  %1025 = vst.msk [vmem:[#allocation3 + $0x60] sm:$0xff] %vm1012_vm7, %v989_v33  ;;  %1743 = vmatmul.mubr.f32.gmra.mrb[2].mxu1 %v1234_v34 }
 0x1da   : > { %928 = vst.msk [vmem:[#allocation3 + $0x68] sm:$0xff] %vm914_vm6, %v893_v32 }
 0x1dc   : > { %v701_v36 = vpop.permute.xlu1 %700 }
 0x1dd   : > { %v605_v35 = vpop.permute.xlu0 %604  ;;  %735 = vst.msk [vmem:[#allocation3 + $0x70] sm:$0xff] %vm720_vm4, %v701_v36 }
 0x1de   : > { %638 = vst.msk [vmem:[#allocation3 + $0x78] sm:$0xff] %vm622_vm3, %v605_v35 }
 0x1e0   : > { %v1086_v38 = vpop.permute.xlu1 %1085 }
 0x1e1   : > { %v991_v37 = vpop.permute.xlu0 %990  ;;  %1122 = vst.msk [vmem:[#allocation3 + $0x60] sm:$0xff] %vm1109_vm8, %v1086_v38 }
 0x1e2   : > { %1026 = vst.msk [vmem:[#allocation3 + $0x68] sm:$0xff] %vm1012_vm7, %v991_v37 }
 0x1e4   : > { %v798_v40 = vpop.permute.xlu1 %797 }
 0x1e5   : > { %v703_v39 = vpop.permute.xlu0 %702  ;;  %832 = vst.msk [vmem:[#allocation3 + $0x70] sm:$0xff] %vm817_vm5, %v798_v40 }
 0x1e6   : > { %736 = vst.msk [vmem:[#allocation3 + $0x78] sm:$0xff] %vm720_vm4, %v703_v39 }
 0x1e8   : > { %v1183_v42 = vpop.permute.xlu1 %1182 }
 0x1e9   : > { %v1088_v41 = vpop.permute.xlu0 %1087  ;;  %1219 = vst.msk [vmem:[#allocation3 + $0x60] sm:$0xff] %vm1206_vm9, %v1183_v42 }
 0x1ea   : > { %1123 = vst.msk [vmem:[#allocation3 + $0x68] sm:$0xff] %vm1109_vm8, %v1088_v41 }
 0x1ec   : > { %v895_v44 = vpop.permute.xlu1 %894 }
 0x1ed   : > { %v800_v43 = vpop.permute.xlu0 %799  ;;  %929 = vst.msk [vmem:[#allocation3 + $0x70] sm:$0xff] %vm914_vm6, %v895_v44 }
 0x1ee   : > { %833 = vst.msk [vmem:[#allocation3 + $0x78] sm:$0xff] %vm817_vm5, %v800_v43 }
 0x1f0   : > { %v897_v46 = vpop.permute.xlu1 %896  ;;  %v1235_v47 = vld [vmem:[#allocation3 + $0x60] sm:$0xff] }
 0x1f1   : > { %v1185_v45 = vpop.permute.xlu0 %1184  ;;  %930 = vst.msk [vmem:[#allocation3 + $0x78] sm:$0xff] %vm914_vm6, %v897_v46  ;;  %1745 = vmatprep.mubr.f32.mxu1 %v1235_v47 }
 0x1f2   : > { %1220 = vst.msk [vmem:[#allocation3 + $0x68] sm:$0xff] %vm1206_vm9, %v1185_v45 }
 0x1f4   : > { %v995_v49 = vpop.permute.xlu1 %994 }
 0x1f5   : > { %v993_v48 = vpop.permute.xlu0 %992  ;;  %1028 = vst.msk [vmem:[#allocation3 + $0x78] sm:$0xff] %vm1012_vm7, %v995_v49 }
 0x1f6   : > { %1027 = vst.msk [vmem:[#allocation3 + $0x70] sm:$0xff] %vm1012_vm7, %v993_v48 }
 0x1f8   : > { %v1092_v51 = vpop.permute.xlu1 %1091 }
 0x1f9   : > { %v1090_v50 = vpop.permute.xlu0 %1089  ;;  %v1236_v52 = vld [vmem:[#allocation3 + $0x68] sm:$0xff]  ;;  %1125 = vst.msk [vmem:[#allocation3 + $0x78] sm:$0xff] %vm1109_vm8, %v1092_v51 }
 0x1fa   : > { %1124 = vst.msk [vmem:[#allocation3 + $0x70] sm:$0xff] %vm1109_vm8, %v1090_v50  ;;  %1746 = vmatmul.mubr.f32.gmra.mrb[4].mxu1 %v1236_v52 }
 0x1fc   : > { %v1189_v54 = vpop.permute.xlu1 %1188 }
 0x1fd   : > { %v1187_v53 = vpop.permute.xlu0 %1186  ;;  %1222 = vst.msk [vmem:[#allocation3 + $0x78] sm:$0xff] %vm1206_vm9, %v1189_v54 }
 0x1fe   : > { %1221 = vst.msk [vmem:[#allocation3 + $0x70] sm:$0xff] %vm1206_vm9, %v1187_v53 }
 0x204   : > { %v1238_v56 = vld [vmem:[#allocation3 + $0x78] sm:$0xff] }
 0x205   : > { %v1237_v55 = vld [vmem:[#allocation3 + $0x70] sm:$0xff] }
 0x206   : > { %1748 = vmatprep.mubr.f32.mxu1 %v1237_v55 }
 0x207   : > { %1749 = vmatmul.mubr.f32.gmra.mrb[6].mxu1 %v1238_v56 }
 0x20c   : > { %v1729_v57 = vpop.f32.mrb[0].mxu0 }
 0x20d   : > { %v1321_v58 = vpop.f32.mrb[1].mxu0 }
 0x20e   : > { %1400 = vxpose.xlu1.b32.start [1/16] (narrow) %v1321_v58, 8 }
 0x212   : > { %1401 = vxpose.xlu1.b32.cont [2/16] (narrow) %v1729_v57, 8 }
 0x21a   : > { %v1436_v12 = vpop.permute.xlu0 %1435 }
 0x22c   : > { %v1732_v61 = vpop.f32.mrb[2].mxu0 }
 0x22d   : > { %v1331_v62 = vpop.f32.mrb[3].mxu0 }
 0x22e   : > { %1402 = vxpose.xlu1.b32.cont [3/16] (narrow) %v1331_v62, 8 }
 0x232   : > { %1403 = vxpose.xlu1.b32.cont [4/16] (narrow) %v1732_v61, 8 }
 0x24c   : > { %v1735_v63 = vpop.f32.mrb[4].mxu0 }
 0x24d   : > { %v1341_v0 = vpop.f32.mrb[5].mxu0 }
 0x24e   : > { %1404 = vxpose.xlu1.b32.cont [5/16] (narrow) %v1341_v0, 8 }
 0x252   : > { %1405 = vxpose.xlu1.b32.cont [6/16] (narrow) %v1735_v63, 8 }
 0x26c   : > { %v1738_v1 = vpop.f32.mrb[6].mxu0 }
 0x26d   : > { %v1351_v2 = vpop.f32.mrb[7].mxu0 }
 0x26e   : > { %1406 = vxpose.xlu1.b32.cont [7/16] (narrow) %v1351_v2, 8 }
 0x272   : > { %1407 = vxpose.xlu1.b32.cont [8/16] (narrow) %v1738_v1, 8 }
 0x28c   : > { %v1741_v3 = vpop.f32.mrb[0].mxu1 }
 0x28d   : > { %v1361_v4 = vpop.f32.mrb[1].mxu1 }
 0x28e   : > { %1408 = vxpose.xlu1.b32.cont [9/16] (narrow) %v1361_v4, 8 }
 0x292   : > { %1409 = vxpose.xlu1.b32.cont [10/16] (narrow) %v1741_v3, 8 }
 0x2ac   : > { %v1744_v5 = vpop.f32.mrb[2].mxu1 }
 0x2ad   : > { %v1371_v6 = vpop.f32.mrb[3].mxu1 }
 0x2ae   : > { %1410 = vxpose.xlu1.b32.cont [11/16] (narrow) %v1371_v6, 8 }
 0x2b2   : > { %1411 = vxpose.xlu1.b32.cont [12/16] (narrow) %v1744_v5, 8 }
 0x2cd   : > { %v1747_v7 = vpop.f32.mrb[4].mxu1 }
 0x2ce   : > { %v1381_v8 = vpop.f32.mrb[5].mxu1 }
 0x2cf   : > { %1412 = vxpose.xlu1.b32.cont [13/16] (narrow) %v1381_v8, 8 }
 0x2d3   : > { %1413 = vxpose.xlu1.b32.cont [14/16] (narrow) %v1747_v7, 8 }
 0x2da   : > { %v1750_v10 = vpop.f32.mrb[6].mxu1 }
 0x2db   : > { %v1391_v11 = vpop.f32.mrb[7].mxu1 }
 0x2dc   : > { %1414 = vxpose.xlu1.b32.cont [15/16] (narrow) %v1391_v11, 8 }
 0x2e0   : > { %1415 = vxpose.xlu1.b32.end [16/16] (narrow) %v1750_v10, 8 }
 0x324   : > { %v1416_v13 = vpop.trf.xlu1 }
 0x325   : > { %v1438_v14 = vadd.f32 %v1436_v12, %v1416_v13 }
 0x327   : > { %v1439_v9 = vmax.f32 %v1438_v14, 0.0 }
 0x329   : > { %1440 = vst [vmem:[%s212_s21] sm:$0xff] %v1439_v9 }
 0x32a   : > { %1894 = shalt.err (!%p1891_p13)
}
 0x32b   : > { %s1895_s5 = scalar_lea.hbm %s2613_s24, 128  ;;  %s1899_s27 = scalar_lea.hbm %s2673_s3, 512 }
 0x32c   : > { %p1896_p0 = scmp.ne.s32.totalorder %s2613_s24, %s1895_s5  ;;  %p1900_p4 = scmp.lt.u32.totalorder %s2613_s24, %s2673_s3 }
 0x32d   : > { %p1901_p5 = scmp.lt.u32.totalorder %s1899_s27, %s1895_s5  ;;  %p1903_p7 = scmp.lt.u32.totalorder %s1895_s5, %s2613_s24 }
 0x32e   : > { %p1897_p1 = pnand %p1896_p0, %p2059_p3 }
 0x32f   : > { %p1902_p6 = por %p1901_p5, %p1900_p4 }
 0x330   : > { %p1898_p2 = pneg %p1897_p1 }
 0x331   : > { %p1904_p9 = por %p1903_p7, %p1902_p6 }
 0x333   : > { %p1905_p10 = pnand %p1904_p9, %p1898_p2 }
 0x335   : > { %1908 = shalt.err (!%p1905_p10)
}
 0x336   : > { %1799 = dma.vmem_to_hbm [thread:$0]  (%p2059_p3), %s2615_s8, 128, %s2613_s24, %s1442_s16  }
 0x337 PF: > { %p1805_p11 = scmp.ge.s32.totalorder %s1975_s19, 2  ;;  %s1471_s4 = sand.u32 1, %s1947_s12  }
 0x338   : > { %s1472_s11 = scalar_lea.sflag [#allocation5], %s1471_s4 }
 0x339   : > { %p1802_p12 = pnand %p1805_p11, %p2068_p8 }
 0x33b   : > { %1942 = dma.done.wait (!%p1802_p12), %s1472_s11, 128  }
 0x33c   : > { %1944 = vsyncadd (!%p1802_p12), %s1472_s11, 4294967168  ;;  %s16_s19 = sadd.s32 1, %s1975_s19   ;;  %s2678_s12 = smov %s1951_s13 }
 0x33d   : > { %p13_p13 = scmp.ge.s32.totalorder %s16_s19, 6   ;;  %s2679_s13 = smov %s1955_s14 }
 0x33e   : > { %s2680_s14 = smov %s2077_s30  ;;  %s2681_s15 = smov %s1967_s17 }
 0x33f   : > { %s2682_s16 = smov %s1971_s18  ;;  %s2683_s17 = smov %s2686_s22 }
 0x340   : > { %s2684_s18 = smov %s2690_s23  ;;  %15 = sbr.rel (!%p13_p13) target bundleno = 5 (0x5), region = 134 }
 0x347   :  { %1477 = vsyncpa [#allocation5], 1 }
 0x348   :  { %1479 = vsyncpa [#allocation5 + $0x1], 1 }

</bundles_post_ra>
